<compile_context>
chip_gen: v7x
topology: tpu7x:2x2x1
jax: 0.10.0
libtpu: 0.0.40
codegen_flags: <defaults>
</compile_context>

<pallas_src>
import jax
import jax.numpy as jnp
from jax.experimental import pallas as pl
from jax.experimental.pallas import tpu as pltpu


def _fused_update_kernel(scale_ref, x_lhs_ref, h_ref, b_ref, x_res_ref, o_ref):
    # scale_ref: SMEM (1,)      f32 -- trainable scalar self.scale
    # x_lhs_ref: VMEM (tm, tk)  f32 -- current_iterate tile (matmul LHS)
    # h_ref:     VMEM (tk, tn)  f32 -- Hessian tile
    # b_ref:     VMEM (1, tn)   f32 -- linear term tile
    # x_res_ref: VMEM (tm, tn)  f32 -- current_iterate tile (residual add)
    # o_ref:     VMEM (tm, tn)  f32 -- output tile, doubles as the K accumulator
    k = pl.program_id(2)

    @pl.when(k == 0)
    def _():
        o_ref[...] = jnp.zeros_like(o_ref)

    # Accumulate the gradient matmul directly into the resident output tile.
    # (Output block index (i, j) is k-invariant -> o_ref lives in VMEM across
    #  the whole K loop; no separate accumulator scratch needed.)
    o_ref[...] += jnp.dot(x_lhs_ref[...], h_ref[...],
                          preferred_element_type=jnp.float32)

    @pl.when(k == pl.num_programs(2) - 1)
    def _():
        s = scale_ref[0]  # read the scalar once
        # out = x + s * (x @ H - b)   (single broadcast multiply)
        o_ref[...] = x_res_ref[...] + s * (o_ref[...] - b_ref[...])


def _largest_divisor_tile(dim, candidates):
    for c in candidates:
        if dim % c == 0:
            return c
    return None


def dummy_forward(scale, x, h, b):
    """out = x + scale * (x @ h - b); x:(B,D) f32, h:(D,D) f32 (symmetric), b:(1,D) f32."""
    B, D = x.shape
    assert h.shape == (D, D) and b.shape == (1, D) and scale.shape == (1,)

    # Adaptive tile selection: biggest tile (<= 512) that divides the dim.
    # Small problems collapse to a single grid step (whole problem in VMEM).
    tm = _largest_divisor_tile(B, (512, 256, 128, 64, 32, 16, 8))
    tn = _largest_divisor_tile(D, (512, 256, 128))
    tk = tn  # H is (D, D); square K/N tiles keep the index maps trivial.

    if tm is None or tn is None:
        # Ragged / sub-tile shapes: a fused XLA expression wins (per-grid-step
        # + custom-call overhead would dominate).  Same f32 math as the kernel.
        grad = jnp.dot(x, h, precision=jax.lax.Precision.HIGHEST) - b
        return x + scale[0] * grad

    grid = (B // tm, D // tn, D // tk)

    grid_spec = pltpu.PrefetchScalarGridSpec(
        num_scalar_prefetch=0,
        grid=grid,
        in_specs=[
            pl.BlockSpec(memory_space=pltpu.MemorySpace.SMEM),   # scale (scalar)
            pl.BlockSpec((tm, tk), lambda i, j, k: (i, k)),      # x  (matmul LHS)
            pl.BlockSpec((tk, tn), lambda i, j, k: (k, j)),      # H
            pl.BlockSpec((1, tn), lambda i, j, k: (0, j)),       # b
            pl.BlockSpec((tm, tn), lambda i, j, k: (i, j)),      # x  (residual)
        ],
        out_specs=pl.BlockSpec((tm, tn), lambda i, j, k: (i, j)),
    )

    return pl.pallas_call(
        _fused_update_kernel,
        out_shape=jax.ShapeDtypeStruct((B, D), jnp.float32),
        grid_spec=grid_spec,
        compiler_params=pltpu.CompilerParams(
            # Row/col axes parallel (v7x megacore), K reduction last + arbitrary.
            dimension_semantics=("parallel", "parallel", "arbitrary"),
            # Fits every generation (v5e/v6e 128 MiB, v7x 64 MiB physical);
            # double-buffered footprint at the largest tiles is ~8 MiB.
            vmem_limit_bytes=48 * 1024 * 1024,
        ),
    )(scale, x, h, b, x)


def update_state(current_iterate):
    # Static method: current_state = current_iterate.reshape((1, -1)); pure glue.
    return jnp.reshape(current_iterate, (1, -1))


if __name__ == "__main__":
    key = jax.random.PRNGKey(0)

    # --- deterministic parameters (mirror __init__) ---
    scale = jnp.array([0.001], dtype=jnp.float32)                    # self.scale
    matrix = jnp.array([[0.001, 1.0], [0.0002, 5.0]], jnp.float32)   # self.matrix (unused in forward)
    fixed_scale = jnp.float32(0.001)                                 # buffer (unused in forward)

    def make_problem(k, B, D):
        k_x, k_a, k_b = jax.random.split(k, 3)
        x = jax.random.normal(k_x, (B, D), dtype=jnp.float32)        # current_iterate
        a = jax.random.normal(k_a, (D, D), dtype=jnp.float32)
        h = (a @ a.T) / D + jnp.eye(D, dtype=jnp.float32)            # symmetric SPD Hessian
        b = jax.random.normal(k_b, (1, D), dtype=jnp.float32)
        return x, h, b

    def reference(s, x, h, b):
        return x + s[0] * (jnp.dot(x, h, precision=jax.lax.Precision.HIGHEST) - b)

    # 1) Small, tile-aligned shape -> single grid step (whole problem in VMEM).
    B, D = 256, 512
    x, h, b = make_problem(key, B, D)
    out = jax.block_until_ready(dummy_forward(scale, x, h, b))
    assert out.shape == (B, D) and out.dtype == jnp.float32
    assert jnp.allclose(out, reference(scale, x, h, b), atol=2e-4, rtol=2e-4), \
        "mismatch vs f32 reference (single-step path)"

    # 2) Larger shape -> exercises the tiled (i, j, k) grid and K accumulation.
    x2, h2, b2 = make_problem(jax.random.PRNGKey(1), 512, 1024)
    out2 = jax.block_until_ready(dummy_forward(scale, x2, h2, b2))
    assert jnp.allclose(out2, reference(scale, x2, h2, b2), atol=2e-4, rtol=2e-4), \
        "mismatch vs f32 reference (tiled path)"

    # 3) Small / ragged shape -> XLA fallback path (same f32 math).
    xs, hs, bs = x[:8, :40], h[:40, :40], b[:, :40]
    out_small = jax.block_until_ready(dummy_forward(scale, xs, hs, bs))
    assert jnp.allclose(out_small, reference(scale, xs, hs, bs), atol=1e-5, rtol=1e-5), \
        "mismatch vs f32 reference (fallback path)"

    # update_state glue (reshape only)
    state = jax.block_until_ready(update_state(out[0]))
    assert state.shape == (1, D)

    print("KERNEL_OK")
</pallas_src>

<mosaic_0001>
module attributes {stable_mosaic.version = 11 : i64} {
  func.func @_fused_update_kernel(%arg0: i32, %arg1: i32, %arg2: i32, %arg3: memref<1xf32, #tpu.memory_space<smem>>, %arg4: memref<256x512xf32, #tpu.memory_space<vmem>>, %arg5: memref<512x512xf32, #tpu.memory_space<vmem>>, %arg6: memref<1x512xf32, #tpu.memory_space<vmem>>, %arg7: memref<256x512xf32, #tpu.memory_space<vmem>>, %arg8: memref<256x512xf32, #tpu.memory_space<vmem>>) attributes {dimension_semantics = [#tpu.dimension_semantics<parallel>, #tpu.dimension_semantics<parallel>, #tpu.dimension_semantics<arbitrary>], iteration_bounds = array<i64: 1, 1, 1>, scalar_prefetch = 0 : i64, scratch_operands = 0 : i64, tpu.core_type = #tpu.core_type<tc>, window_params = [{transform_indices = @transform_0, window_bounds = array<i64: 1>}, {transform_indices = @transform_1, window_bounds = array<i64: 256, 512>}, {transform_indices = @transform_2, window_bounds = array<i64: 512, 512>}, {transform_indices = @transform_3, window_bounds = array<i64: 1, 512>}, {transform_indices = @transform_4, window_bounds = array<i64: 256, 512>}, {transform_indices = @transform_5, window_bounds = array<i64: 256, 512>}]} {
    %c0_i32 = arith.constant 0 : i32
    %0 = arith.cmpi eq, %arg2, %c0_i32 : i32
    %1 = arith.extui %0 : i1 to i32
    %c0_i32_0 = arith.constant 0 : i32
    %2 = arith.cmpi ne, %1, %c0_i32_0 : i32
    scf.if %2 {
      %cst_10 = arith.constant 0.000000e+00 : f32
      %12 = vector.broadcast %cst_10 : f32 to vector<256x512xf32>
      %c0_11 = arith.constant 0 : index
      %c0_12 = arith.constant 0 : index
      %13 = vector.load %arg8[%c0_11, %c0_12] : memref<256x512xf32, #tpu.memory_space<vmem>>, vector<256x512xf32>
      tpu.vector_store %arg8[%c0_11, %c0_12], %12 {strides = array<i32>} : memref<256x512xf32, #tpu.memory_space<vmem>>, vector<256x512xf32>,
    } else {
    }
    %c0 = arith.constant 0 : index
    %c0_1 = arith.constant 0 : index
    %3 = vector.load %arg8[%c0, %c0_1] : memref<256x512xf32, #tpu.memory_space<vmem>>, vector<256x512xf32>
    %c0_2 = arith.constant 0 : index
    %c0_3 = arith.constant 0 : index
    %4 = vector.load %arg4[%c0_2, %c0_3] : memref<256x512xf32, #tpu.memory_space<vmem>>, vector<256x512xf32>
    %c0_4 = arith.constant 0 : index
    %c0_5 = arith.constant 0 : index
    %5 = vector.load %arg5[%c0_4, %c0_5] : memref<512x512xf32, #tpu.memory_space<vmem>>, vector<512x512xf32>
    %cst = arith.constant dense<0.000000e+00> : vector<256x512xf32>
    %6 = tpu.matmul %4, %5, %cst {dimension_numbers = #tpu.dot_dimension_numbers<[1], [0], [0], [1], [0, 0, 1, 1], [], []>} : vector<256x512xf32>, vector<512x512xf32>, vector<256x512xf32> -> vector<256x512xf32>
    %7 = arith.addf %3, %6 : vector<256x512xf32>
    %c0_6 = arith.constant 0 : index
    %c0_7 = arith.constant 0 : index
    %8 = vector.load %arg8[%c0_6, %c0_7] : memref<256x512xf32, #tpu.memory_space<vmem>>, vector<256x512xf32>
    tpu.vector_store %arg8[%c0_6, %c0_7], %7 {strides = array<i32>} : memref<256x512xf32, #tpu.memory_space<vmem>>, vector<256x512xf32>,
    %c0_i32_8 = arith.constant 0 : i32
    %9 = arith.cmpi eq, %arg2, %c0_i32_8 : i32
    %10 = arith.extui %9 : i1 to i32
    %c0_i32_9 = arith.constant 0 : i32
    %11 = arith.cmpi ne, %10, %c0_i32_9 : i32
    scf.if %11 {
      %c0_10 = arith.constant 0 : index
      %12 = memref.load %arg3[%c0_10] : memref<1xf32, #tpu.memory_space<smem>>
      %c0_11 = arith.constant 0 : index
      %c0_12 = arith.constant 0 : index
      %13 = vector.load %arg7[%c0_11, %c0_12] : memref<256x512xf32, #tpu.memory_space<vmem>>, vector<256x512xf32>
      %c0_13 = arith.constant 0 : index
      %c0_14 = arith.constant 0 : index
      %14 = vector.load %arg8[%c0_13, %c0_14] : memref<256x512xf32, #tpu.memory_space<vmem>>, vector<256x512xf32>
      %c0_15 = arith.constant 0 : index
      %c0_16 = arith.constant 0 : index
      %15 = vector.load %arg6[%c0_15, %c0_16] : memref<1x512xf32, #tpu.memory_space<vmem>>, vector<1x512xf32>
      %16 = vector.broadcast %15 : vector<1x512xf32> to vector<256x512xf32>
      %17 = arith.subf %14, %16 : vector<256x512xf32>
      %18 = vector.broadcast %12 : f32 to vector<256x512xf32>
      %19 = arith.mulf %18, %17 : vector<256x512xf32>
      %20 = arith.addf %13, %19 : vector<256x512xf32>
      %c0_17 = arith.constant 0 : index
      %c0_18 = arith.constant 0 : index
      %21 = vector.load %arg8[%c0_17, %c0_18] : memref<256x512xf32, #tpu.memory_space<vmem>>, vector<256x512xf32>
      tpu.vector_store %arg8[%c0_17, %c0_18], %20 {strides = array<i32>} : memref<256x512xf32, #tpu.memory_space<vmem>>, vector<256x512xf32>,
    } else {
    }
    return
  }
  func.func @transform_0(%arg0: i32, %arg1: i32, %arg2: i32) -> i32 {
    %c0_i32 = arith.constant 0 : i32
    %c0_i32_0 = arith.constant 0 : i32
    return %c0_i32 : i32
  }
  func.func @transform_1(%arg0: i32, %arg1: i32, %arg2: i32) -> (i32, i32) {
    %c0_i32 = arith.constant 0 : i32
    return %arg0, %arg2 : i32, i32
  }
  func.func @transform_2(%arg0: i32, %arg1: i32, %arg2: i32) -> (i32, i32) {
    %c0_i32 = arith.constant 0 : i32
    return %arg2, %arg1 : i32, i32
  }
  func.func @transform_3(%arg0: i32, %arg1: i32, %arg2: i32) -> (i32, i32) {
    %c0_i32 = arith.constant 0 : i32
    %c0_i32_0 = arith.constant 0 : i32
    return %c0_i32, %arg1 : i32, i32
  }
  func.func @transform_4(%arg0: i32, %arg1: i32, %arg2: i32) -> (i32, i32) {
    %c0_i32 = arith.constant 0 : i32
    return %arg0, %arg1 : i32, i32
  }
  func.func @transform_5(%arg0: i32, %arg1: i32, %arg2: i32) -> (i32, i32) {
    %c0_i32 = arith.constant 0 : i32
    return %arg0, %arg1 : i32, i32
  }
}

</mosaic_0001>

<bundles_post_ra>
// kernel: tpu_custom_call.1
= control target key start
LH: loop header
LB: loop body
LE: loop exit
PB: predicated region body
PF: predicated region fallthrough
CT: control target
= control target key end

     0   :  { %11 = vsyncpa [#allocation4], 0  ;;  %s3664_s0 = inlined_call_operand.<no memory space> [shape: f32[1], index: 0, kind: input, shape index: {}]   ;;  %s3665_s1 = inlined_call_operand.hbm [shape: f32[256,512], index: 1, kind: input, shape index: {}]   ;;  %s3666_s2 = inlined_call_operand.hbm [shape: f32[512,512], index: 2, kind: input, shape index: {}]   ;;  %s3667_s3 = inlined_call_operand.vmem [shape: f32[1,512], index: 3, kind: input, shape index: {}]   ;;  %s3668_s4 = inlined_call_operand.hbm [shape: f32[256,512], index: 4, kind: input, shape index: {}]   ;;  %s3669_s5 = inlined_call_operand.hbm [shape: f32[256,512], index: 5, kind: output, shape index: {}]  }
   0x1   :  { %12 = vsyncpa [#allocation7], 0 }
   0x2   :  { %13 = vsyncpa [#allocation5], 0  ;;  %s3289_s18 = smov [#allocation6]   ;;  %s3290_s20 = smov [#allocation3]  }
   0x3   :  { %s33_s19 = sshll.u32 %s3289_s18, 4  ;;  %s21_s21 = sshll.u32 %s3290_s20, 4  ;;  %s34_s19 = int_to_ptr.vmem [resolvable:$true] %s33_s19  ;;  %s3325_s21 = int_to_ptr.vmem [resolvable:$true] %s21_s21 }
   0x4   :  { %s3195_s24 = scalar_lea.hbm %s3666_s2, 32768 }
   0x5   :  { %p3196_p0 = scmp.ne.s32.totalorder %s3666_s2, %s3195_s24  ;;  %p3199_p1 = scmp.lt.u32.totalorder %s3195_s24, %s3666_s2 }
   0x7   :  { %p3201_p2 = pnand %p3199_p1, %p3196_p0 }
   0x9   :  { %3204 = shalt.err (!%p3201_p2)
}
   0xa   :  { %s3205_s29 = scalar_lea.vmem %s34_s19, 32768  ;;  %p3210_p4 = scmp.lt.s32.totalorder %s34_s19, %s34_s19 }
   0xb   :  { %p3206_p3 = scmp.ne.s32.totalorder %s34_s19, %s3205_s29  ;;  %p3211_p5 = scmp.lt.s32.totalorder %s3205_s29, %s3205_s29 }
   0xd   :  { %p3212_p6 = por %p3211_p5, %p3210_p4 }
   0xf   :  { %p3213_p7 = pnand %p3212_p6, %p3206_p3 }
  0x11   :  { %3216 = shalt.err (!%p3213_p7)
}
  0x12   :  { %s3291_s30 = smov 512   ;;  %s3292_s6 = smov 32  }
  0x13   :  { %39 = dma.hbm_to_vmem [thread:$0]  %s3666_s2, 32768, %s34_s19, [#allocation7], %s3291_s30, %s3291_s30, %s3292_s6  }
  0x14   :  { %s3217_s11 = scalar_lea.hbm %s3665_s1, 16384 }
  0x15   :  { %p3218_p8 = scmp.ne.s32.totalorder %s3665_s1, %s3217_s11  ;;  %p3221_p9 = scmp.lt.u32.totalorder %s3217_s11, %s3665_s1 }
  0x17   :  { %p3223_p10 = pnand %p3221_p9, %p3218_p8 }
  0x19   :  { %3226 = shalt.err (!%p3223_p10)
}
  0x1a   :  { %s3227_s16 = scalar_lea.vmem %s3325_s21, 16384  ;;  %p3232_p12 = scmp.lt.s32.totalorder %s3325_s21, %s3325_s21 }
  0x1b   :  { %p3228_p11 = scmp.ne.s32.totalorder %s3325_s21, %s3227_s16  ;;  %p3233_p13 = scmp.lt.s32.totalorder %s3227_s16, %s3227_s16 }
  0x1d   :  { %p3234_p0 = por %p3233_p13, %p3232_p12 }
  0x1f   :  { %p3235_p1 = pnand %p3234_p0, %p3228_p11 }
  0x21   :  { %3238 = shalt.err (!%p3235_p1)
}
  0x22   :  { %27 = dma.hbm_to_vmem [thread:$0]  %s3665_s1, 16384, %s3325_s21, [#allocation4], %s3291_s30, %s3291_s30, %s3292_s6  }
  0x23   :  { %s3293_s18 = smov [#allocation8]   ;;  %s3239_s23 = scalar_lea.hbm %s3668_s4, 16384 }
  0x24   :  { %s47_s19 = sshll.u32 %s3293_s18, 4  ;;  %p3240_p2 = scmp.ne.s32.totalorder %s3668_s4, %s3239_s23  ;;  %s48_s19 = int_to_ptr.vmem [resolvable:$true] %s47_s19 }
  0x25   :  { %p3243_p3 = scmp.lt.u32.totalorder %s3239_s23, %s3668_s4 }
  0x27   :  { %p3245_p4 = pnand %p3243_p3, %p3240_p2 }
  0x29   :  { %3248 = shalt.err (!%p3245_p4)
}
  0x2a   :  { %s3249_s28 = scalar_lea.vmem %s48_s19, 16384  ;;  %p3254_p6 = scmp.lt.s32.totalorder %s48_s19, %s48_s19 }
  0x2b   :  { %p3250_p5 = scmp.ne.s32.totalorder %s48_s19, %s3249_s28  ;;  %p3255_p7 = scmp.lt.s32.totalorder %s3249_s28, %s3249_s28 }
  0x2d   :  { %p3256_p8 = por %p3255_p7, %p3254_p6 }
  0x2f   :  { %p3257_p9 = pnand %p3256_p8, %p3250_p5 }
  0x31   :  { %3260 = shalt.err (!%p3257_p9)
}
  0x32   :  { %53 = dma.hbm_to_vmem [thread:$0]  %s3668_s4, 16384, %s48_s19, [#allocation7], %s3291_s30, %s3291_s30, %s3292_s6  }
  0x33   :  { %3283 = dma.done.wait [#allocation4], 16384  }
  0x34   :  { %3284 = vsyncadd [#allocation4], 4294950912 }
  0x35   :  { %3285 = dma.done.wait [#allocation7], 49152  }
  0x36   :  { %3286 = vsyncadd [#allocation7], 4294918144  ;;  %v452_v0 = vld [vmem:[#allocation6 + $0x8] sm:$0xff]  ;;  %v454_v2 = vld [vmem:[#allocation6 + $0x18] sm:$0xff] }
  0x37   :  { %v456_v1 = vld [vmem:[#allocation6 + $0x28] sm:$0xff]  ;;  %v458_v4 = vld [vmem:[#allocation6 + $0x38] sm:$0xff]  ;;  %v451_v5 = vld [vmem:[#allocation6] sm:$0xff] }
  0x38   :  { %v2804_v3 = vpack.c.bf16 %v456_v1, %v452_v0  ;;  %v455_v6 = vld [vmem:[#allocation6 + $0x20] sm:$0xff]  ;;  %v2932_v7 = vpack.c.bf16 %v458_v4, %v454_v2  ;;  %v453_v9 = vld [vmem:[#allocation6 + $0x10] sm:$0xff]  ;;  %v460_v11 = vld [vmem:[#allocation6 + $0x48] sm:$0xff] }
  0x39   :  { %v2806_v8 = vpack.c.bf16 %v455_v6, %v451_v5  ;;  %v457_v10 = vld [vmem:[#allocation6 + $0x30] sm:$0xff]  ;;  %v464_v13 = vld [vmem:[#allocation6 + $0x68] sm:$0xff]  ;;  %v462_v14 = vld [vmem:[#allocation6 + $0x58] sm:$0xff] }
  0x3a   :  { %2805 = vmatprep.subr.bf16.mxu0 %v2804_v3  ;;  %v2934_v12 = vpack.c.bf16 %v457_v10, %v453_v9  ;;  %v466_v15 = vld [vmem:[#allocation6 + $0x78] sm:$0xff]  ;;  %2933 = vmatprep.subr.bf16.mxu1 %v2932_v7  ;;  %v2808_v16 = vpack.c.bf16 %v464_v13, %v460_v11  ;;  %v459_v18 = vld [vmem:[#allocation6 + $0x40] sm:$0xff]  ;;  %v461_v20 = vld [vmem:[#allocation6 + $0x50] sm:$0xff] }
  0x3b   :  { %2807 = vmatpush1.bf16.msra.mxu0 %v2806_v8  ;;  %v2936_v17 = vpack.c.bf16 %v466_v15, %v462_v14  ;;  %v463_v19 = vld [vmem:[#allocation6 + $0x60] sm:$0xff]  ;;  %v465_v22 = vld [vmem:[#allocation6 + $0x70] sm:$0xff]  ;;  %v468_v23 = vld [vmem:[#allocation6 + $0x88] sm:$0xff] }
  0x3c   :  { %2935 = vmatpush1.bf16.msra.mxu1 %v2934_v12  ;;  %v2810_v21 = vpack.c.bf16 %v463_v19, %v459_v18  ;;  %v472_v24 = vld [vmem:[#allocation6 + $0xa8] sm:$0xff]  ;;  %2809 = vmatprep.subr.bf16.mxu0 %v2808_v16  ;;  %v2938_v25 = vpack.c.bf16 %v465_v22, %v461_v20  ;;  %v470_v27 = vld [vmem:[#allocation6 + $0x98] sm:$0xff]  ;;  %v467_v29 = vld [vmem:[#allocation6 + $0x80] sm:$0xff] }
  0x3d   :  { %2937 = vmatprep.subr.bf16.mxu1 %v2936_v17  ;;  %v2812_v26 = vpack.c.bf16 %v472_v24, %v468_v23  ;;  %v474_v28 = vld [vmem:[#allocation6 + $0xb8] sm:$0xff]  ;;  %v471_v31 = vld [vmem:[#allocation6 + $0xa0] sm:$0xff]  ;;  %v469_v32 = vld [vmem:[#allocation6 + $0x90] sm:$0xff] }
  0x3e   :  { %v2940_v30 = vpack.c.bf16 %v474_v28, %v470_v27  ;;  %v473_v33 = vld [vmem:[#allocation6 + $0xb0] sm:$0xff]  ;;  %v2814_v34 = vpack.c.bf16 %v471_v31, %v467_v29  ;;  %v476_v35 = vld [vmem:[#allocation6 + $0xc8] sm:$0xff]  ;;  %v478_v37 = vld [vmem:[#allocation6 + $0xd8] sm:$0xff] }
  0x3f   :  { %2811 = vmatpush1.bf16.msra.mxu0 %v2810_v21  ;;  %v480_v36 = vld [vmem:[#allocation6 + $0xe8] sm:$0xff]  ;;  %v2942_v38 = vpack.c.bf16 %v473_v33, %v469_v32  ;;  %v482_v40 = vld [vmem:[#allocation6 + $0xf8] sm:$0xff]  ;;  %v475_v41 = vld [vmem:[#allocation6 + $0xc0] sm:$0xff] }
  0x40   :  { %2939 = vmatpush1.bf16.msra.mxu1 %v2938_v25  ;;  %2813 = vmatprep.subr.bf16.mxu0 %v2812_v26  ;;  %v2816_v39 = vpack.c.bf16 %v480_v36, %v476_v35  ;;  %v479_v42 = vld [vmem:[#allocation6 + $0xe0] sm:$0xff]  ;;  %v2944_v43 = vpack.c.bf16 %v482_v40, %v478_v37  ;;  %v477_v44 = vld [vmem:[#allocation6 + $0xd0] sm:$0xff]  ;;  %v484_v46 = vld [vmem:[#allocation6 + $0x108] sm:$0xff] }
  0x41   :  { %2941 = vmatprep.subr.bf16.mxu1 %v2940_v30  ;;  %v481_v45 = vld [vmem:[#allocation6 + $0xf0] sm:$0xff]  ;;  %v488_v47 = vld [vmem:[#allocation6 + $0x128] sm:$0xff]  ;;  %v486_v48 = vld [vmem:[#allocation6 + $0x118] sm:$0xff]  ;;  %v2818_v50 = vpack.c.bf16 %v479_v42, %v475_v41 }
  0x42   :  { %v490_v49 = vld [vmem:[#allocation6 + $0x138] sm:$0xff]  ;;  %v2946_v51 = vpack.c.bf16 %v481_v45, %v477_v44  ;;  %v2820_v52 = vpack.c.bf16 %v488_v47, %v484_v46  ;;  %v483_v53 = vld [vmem:[#allocation6 + $0x100] sm:$0xff]  ;;  %v485_v55 = vld [vmem:[#allocation6 + $0x110] sm:$0xff] }
  0x43   :  { %2815 = vmatpush1.bf16.msra.mxu0 %v2814_v34  ;;  %v487_v54 = vld [vmem:[#allocation6 + $0x120] sm:$0xff]  ;;  %v2948_v56 = vpack.c.bf16 %v490_v49, %v486_v48  ;;  %v489_v57 = vld [vmem:[#allocation6 + $0x130] sm:$0xff]  ;;  %v492_v58 = vld [vmem:[#allocation6 + $0x148] sm:$0xff] }
  0x44   :  { %2943 = vmatpush1.bf16.msra.mxu1 %v2942_v38  ;;  %2817 = vmatprep.subr.bf16.mxu0 %v2816_v39  ;;  %v496_v59 = vld [vmem:[#allocation6 + $0x168] sm:$0xff]  ;;  %v494_v60 = vld [vmem:[#allocation6 + $0x158] sm:$0xff]  ;;  %v2822_v62 = vpack.c.bf16 %v487_v54, %v483_v53  ;;  %v2950_v63 = vpack.c.bf16 %v489_v57, %v485_v55  ;;  %v491_v1 = vld [vmem:[#allocation6 + $0x140] sm:$0xff] }
  0x45   :  { %2945 = vmatprep.subr.bf16.mxu1 %v2944_v43  ;;  %v498_v61 = vld [vmem:[#allocation6 + $0x178] sm:$0xff]  ;;  %v2824_v0 = vpack.c.bf16 %v496_v59, %v492_v58  ;;  %v495_v2 = vld [vmem:[#allocation6 + $0x160] sm:$0xff]  ;;  %v493_v3 = vld [vmem:[#allocation6 + $0x150] sm:$0xff] }
  0x46   :  { %v2952_v4 = vpack.c.bf16 %v498_v61, %v494_v60  ;;  %v497_v5 = vld [vmem:[#allocation6 + $0x170] sm:$0xff]  ;;  %v500_v6 = vld [vmem:[#allocation6 + $0x188] sm:$0xff]  ;;  %v502_v8 = vld [vmem:[#allocation6 + $0x198] sm:$0xff]  ;;  %v2826_v10 = vpack.c.bf16 %v495_v2, %v491_v1 }
  0x47   :  { %2819 = vmatpush1.bf16.msra.mxu0 %v2818_v50  ;;  %v504_v7 = vld [vmem:[#allocation6 + $0x1a8] sm:$0xff]  ;;  %v506_v9 = vld [vmem:[#allocation6 + $0x1b8] sm:$0xff]  ;;  %v2954_v11 = vpack.c.bf16 %v497_v5, %v493_v3  ;;  %v499_v13 = vld [vmem:[#allocation6 + $0x180] sm:$0xff] }
  0x48   :  { %2947 = vmatpush1.bf16.msra.mxu1 %v2946_v51  ;;  %2821 = vmatprep.subr.bf16.mxu0 %v2820_v52  ;;  %v2828_v12 = vpack.c.bf16 %v504_v7, %v500_v6  ;;  %v503_v14 = vld [vmem:[#allocation6 + $0x1a0] sm:$0xff]  ;;  %v501_v15 = vld [vmem:[#allocation6 + $0x190] sm:$0xff]  ;;  %v2956_v16 = vpack.c.bf16 %v506_v9, %v502_v8  ;;  %v508_v18 = vld [vmem:[#allocation6 + $0x1c8] sm:$0xff] }
  0x49   :  { %2949 = vmatprep.subr.bf16.mxu1 %v2948_v56  ;;  %v505_v17 = vld [vmem:[#allocation6 + $0x1b0] sm:$0xff]  ;;  %v512_v19 = vld [vmem:[#allocation6 + $0x1e8] sm:$0xff]  ;;  %v510_v20 = vld [vmem:[#allocation6 + $0x1d8] sm:$0xff]  ;;  %v2830_v22 = vpack.c.bf16 %v503_v14, %v499_v13 }
  0x4a   :  { %v514_v21 = vld [vmem:[#allocation6 + $0x1f8] sm:$0xff]  ;;  %v2958_v23 = vpack.c.bf16 %v505_v17, %v501_v15  ;;  %v2832_v24 = vpack.c.bf16 %v512_v19, %v508_v18  ;;  %v507_v25 = vld [vmem:[#allocation6 + $0x1c0] sm:$0xff]  ;;  %v509_v27 = vld [vmem:[#allocation6 + $0x1d0] sm:$0xff] }
  0x4b   :  { %2823 = vmatpush1.bf16.msra.mxu0 %v2822_v62  ;;  %v511_v26 = vld [vmem:[#allocation6 + $0x1e0] sm:$0xff]  ;;  %v2960_v28 = vpack.c.bf16 %v514_v21, %v510_v20  ;;  %v513_v29 = vld [vmem:[#allocation6 + $0x1f0] sm:$0xff]  ;;  %v516_v30 = vld [vmem:[#allocation6 + $0x208] sm:$0xff] }
  0x4c   :  { %2951 = vmatpush1.bf16.msra.mxu1 %v2950_v63  ;;  %2825 = vmatprep.subr.bf16.mxu0 %v2824_v0  ;;  %v520_v31 = vld [vmem:[#allocation6 + $0x228] sm:$0xff]  ;;  %v518_v32 = vld [vmem:[#allocation6 + $0x218] sm:$0xff]  ;;  %v2834_v34 = vpack.c.bf16 %v511_v26, %v507_v25  ;;  %v2962_v35 = vpack.c.bf16 %v513_v29, %v509_v27  ;;  %v515_v37 = vld [vmem:[#allocation6 + $0x200] sm:$0xff] }
  0x4d   :  { %2953 = vmatprep.subr.bf16.mxu1 %v2952_v4  ;;  %v522_v33 = vld [vmem:[#allocation6 + $0x238] sm:$0xff]  ;;  %v2836_v36 = vpack.c.bf16 %v520_v31, %v516_v30  ;;  %v519_v38 = vld [vmem:[#allocation6 + $0x220] sm:$0xff]  ;;  %v517_v39 = vld [vmem:[#allocation6 + $0x210] sm:$0xff] }
  0x4e   :  { %v2964_v40 = vpack.c.bf16 %v522_v33, %v518_v32  ;;  %v521_v41 = vld [vmem:[#allocation6 + $0x230] sm:$0xff]  ;;  %v524_v42 = vld [vmem:[#allocation6 + $0x248] sm:$0xff]  ;;  %v526_v44 = vld [vmem:[#allocation6 + $0x258] sm:$0xff]  ;;  %v2838_v46 = vpack.c.bf16 %v519_v38, %v515_v37 }
  0x4f   :  { %2827 = vmatpush1.bf16.msra.mxu0 %v2826_v10  ;;  %v528_v43 = vld [vmem:[#allocation6 + $0x268] sm:$0xff]  ;;  %v530_v45 = vld [vmem:[#allocation6 + $0x278] sm:$0xff]  ;;  %v2966_v47 = vpack.c.bf16 %v521_v41, %v517_v39  ;;  %v523_v49 = vld [vmem:[#allocation6 + $0x240] sm:$0xff] }
  0x50   :  { %2955 = vmatpush1.bf16.msra.mxu1 %v2954_v11  ;;  %2829 = vmatprep.subr.bf16.mxu0 %v2828_v12  ;;  %v2840_v48 = vpack.c.bf16 %v528_v43, %v524_v42  ;;  %v527_v50 = vld [vmem:[#allocation6 + $0x260] sm:$0xff]  ;;  %v525_v51 = vld [vmem:[#allocation6 + $0x250] sm:$0xff]  ;;  %v2968_v52 = vpack.c.bf16 %v530_v45, %v526_v44  ;;  %v532_v54 = vld [vmem:[#allocation6 + $0x288] sm:$0xff] }
  0x51   :  { %2957 = vmatprep.subr.bf16.mxu1 %v2956_v16  ;;  %v529_v53 = vld [vmem:[#allocation6 + $0x270] sm:$0xff]  ;;  %v536_v55 = vld [vmem:[#allocation6 + $0x2a8] sm:$0xff]  ;;  %v534_v56 = vld [vmem:[#allocation6 + $0x298] sm:$0xff]  ;;  %v2842_v58 = vpack.c.bf16 %v527_v50, %v523_v49 }
  0x52   :  { %v538_v57 = vld [vmem:[#allocation6 + $0x2b8] sm:$0xff]  ;;  %v2970_v59 = vpack.c.bf16 %v529_v53, %v525_v51  ;;  %v2844_v60 = vpack.c.bf16 %v536_v55, %v532_v54  ;;  %v531_v61 = vld [vmem:[#allocation6 + $0x280] sm:$0xff]  ;;  %v533_v63 = vld [vmem:[#allocation6 + $0x290] sm:$0xff] }
  0x53   :  { %2831 = vmatpush1.bf16.msra.mxu0 %v2830_v22  ;;  %v535_v62 = vld [vmem:[#allocation6 + $0x2a0] sm:$0xff]  ;;  %v2972_v0 = vpack.c.bf16 %v538_v57, %v534_v56  ;;  %v537_v1 = vld [vmem:[#allocation6 + $0x2b0] sm:$0xff]  ;;  %v540_v2 = vld [vmem:[#allocation6 + $0x2c8] sm:$0xff] }
  0x54   :  { %2959 = vmatpush1.bf16.msra.mxu1 %v2958_v23  ;;  %2833 = vmatprep.subr.bf16.mxu0 %v2832_v24  ;;  %v544_v3 = vld [vmem:[#allocation6 + $0x2e8] sm:$0xff]  ;;  %v542_v4 = vld [vmem:[#allocation6 + $0x2d8] sm:$0xff]  ;;  %v2846_v6 = vpack.c.bf16 %v535_v62, %v531_v61  ;;  %v539_v7 = vld [vmem:[#allocation6 + $0x2c0] sm:$0xff]  ;;  %v2974_v8 = vpack.c.bf16 %v537_v1, %v533_v63 }
  0x55   :  { %2961 = vmatprep.subr.bf16.mxu1 %v2960_v28  ;;  %v546_v5 = vld [vmem:[#allocation6 + $0x2f8] sm:$0xff]  ;;  %v2848_v9 = vpack.c.bf16 %v544_v3, %v540_v2  ;;  %v543_v10 = vld [vmem:[#allocation6 + $0x2e0] sm:$0xff]  ;;  %v541_v11 = vld [vmem:[#allocation6 + $0x2d0] sm:$0xff] }
  0x56   :  { %v545_v12 = vld [vmem:[#allocation6 + $0x2f0] sm:$0xff]  ;;  %v2976_v13 = vpack.c.bf16 %v546_v5, %v542_v4  ;;  %v548_v14 = vld [vmem:[#allocation6 + $0x308] sm:$0xff]  ;;  %v550_v17 = vld [vmem:[#allocation6 + $0x318] sm:$0xff]  ;;  %v2850_v19 = vpack.c.bf16 %v543_v10, %v539_v7 }
  0x57   :  { %2835 = vmatpush1.bf16.msra.mxu0 %v2834_v34  ;;  %v552_v15 = vld [vmem:[#allocation6 + $0x328] sm:$0xff]  ;;  %v554_v18 = vld [vmem:[#allocation6 + $0x338] sm:$0xff]  ;;  %v2978_v20 = vpack.c.bf16 %v545_v12, %v541_v11  ;;  %v547_v22 = vld [vmem:[#allocation6 + $0x300] sm:$0xff] }
  0x58   :  { %2963 = vmatpush1.bf16.msra.mxu1 %v2962_v35  ;;  %2837 = vmatprep.subr.bf16.mxu0 %v2836_v36  ;;  %v324_v16 = vld [vmem:[#allocation3 + $0x8] sm:$0xff]  ;;  %v2852_v21 = vpack.c.bf16 %v552_v15, %v548_v14  ;;  %v551_v23 = vld [vmem:[#allocation6 + $0x320] sm:$0xff]  ;;  %v549_v24 = vld [vmem:[#allocation6 + $0x310] sm:$0xff]  ;;  %v2980_v25 = vpack.c.bf16 %v554_v18, %v550_v17 }
  0x59   :  { %2965 = vmatprep.subr.bf16.mxu1 %v2964_v40  ;;  %771 = vmatprep.mubr.f32.mxu0 %v324_v16  ;;  %v553_v26 = vld [vmem:[#allocation6 + $0x330] sm:$0xff]  ;;  %v556_v27 = vld [vmem:[#allocation6 + $0x348] sm:$0xff]  ;;  %v558_v29 = vld [vmem:[#allocation6 + $0x358] sm:$0xff]  ;;  %v2854_v31 = vpack.c.bf16 %v551_v23, %v547_v22 }
  0x5a   :  { %1285 = vmatprep.mubr.f32.mxu1 %v324_v16  ;;  %v560_v28 = vld [vmem:[#allocation6 + $0x368] sm:$0xff]  ;;  %v562_v30 = vld [vmem:[#allocation6 + $0x378] sm:$0xff]  ;;  %v2982_v32 = vpack.c.bf16 %v553_v26, %v549_v24  ;;  %v555_v34 = vld [vmem:[#allocation6 + $0x340] sm:$0xff] }
  0x5b   :  { %2839 = vmatpush1.bf16.msra.mxu0 %v2838_v46  ;;  %v2856_v33 = vpack.c.bf16 %v560_v28, %v556_v27  ;;  %v559_v35 = vld [vmem:[#allocation6 + $0x360] sm:$0xff]  ;;  %v557_v36 = vld [vmem:[#allocation6 + $0x350] sm:$0xff]  ;;  %v2984_v37 = vpack.c.bf16 %v562_v30, %v558_v29  ;;  %v564_v39 = vld [vmem:[#allocation6 + $0x388] sm:$0xff] }
  0x5c   :  { %2967 = vmatpush1.bf16.msra.mxu1 %v2966_v47  ;;  %2841 = vmatprep.subr.bf16.mxu0 %v2840_v48  ;;  %v561_v38 = vld [vmem:[#allocation6 + $0x370] sm:$0xff]  ;;  %v568_v40 = vld [vmem:[#allocation6 + $0x3a8] sm:$0xff]  ;;  %v566_v41 = vld [vmem:[#allocation6 + $0x398] sm:$0xff]  ;;  %v2858_v43 = vpack.c.bf16 %v559_v35, %v555_v34 }
  0x5d   :  { %2969 = vmatprep.subr.bf16.mxu1 %v2968_v52  ;;  %v570_v42 = vld [vmem:[#allocation6 + $0x3b8] sm:$0xff]  ;;  %v2986_v44 = vpack.c.bf16 %v561_v38, %v557_v36  ;;  %v2860_v45 = vpack.c.bf16 %v568_v40, %v564_v39  ;;  %v563_v46 = vld [vmem:[#allocation6 + $0x380] sm:$0xff]  ;;  %v565_v48 = vld [vmem:[#allocation6 + $0x390] sm:$0xff] }
  0x5e   :  { %v567_v47 = vld [vmem:[#allocation6 + $0x3a0] sm:$0xff]  ;;  %v2988_v49 = vpack.c.bf16 %v570_v42, %v566_v41  ;;  %v569_v50 = vld [vmem:[#allocation6 + $0x3b0] sm:$0xff]  ;;  %v572_v51 = vld [vmem:[#allocation6 + $0x3c8] sm:$0xff] }
  0x5f   :  { %2843 = vmatpush1.bf16.msra.mxu0 %v2842_v58  ;;  %v576_v52 = vld [vmem:[#allocation6 + $0x3e8] sm:$0xff]  ;;  %v574_v53 = vld [vmem:[#allocation6 + $0x3d8] sm:$0xff]  ;;  %v2862_v55 = vpack.c.bf16 %v567_v47, %v563_v46  ;;  %v2990_v56 = vpack.c.bf16 %v569_v50, %v565_v48  ;;  %v571_v58 = vld [vmem:[#allocation6 + $0x3c0] sm:$0xff] }
  0x60   :  { %2971 = vmatpush1.bf16.msra.mxu1 %v2970_v59  ;;  %2845 = vmatprep.subr.bf16.mxu0 %v2844_v60  ;;  %v578_v54 = vld [vmem:[#allocation6 + $0x3f8] sm:$0xff]  ;;  %v2864_v57 = vpack.c.bf16 %v576_v52, %v572_v51  ;;  %v575_v59 = vld [vmem:[#allocation6 + $0x3e0] sm:$0xff]  ;;  %v573_v60 = vld [vmem:[#allocation6 + $0x3d0] sm:$0xff] }
  0x61   :  { %2973 = vmatprep.subr.bf16.mxu1 %v2972_v0  ;;  %v2992_v61 = vpack.c.bf16 %v578_v54, %v574_v53  ;;  %v577_v62 = vld [vmem:[#allocation6 + $0x3f0] sm:$0xff]  ;;  %v580_v63 = vld [vmem:[#allocation6 + $0x408] sm:$0xff]  ;;  %v582_v1 = vld [vmem:[#allocation6 + $0x418] sm:$0xff]  ;;  %v2866_v3 = vpack.c.bf16 %v575_v59, %v571_v58 }
  0x62   :  { %v584_v0 = vld [vmem:[#allocation6 + $0x428] sm:$0xff]  ;;  %v586_v2 = vld [vmem:[#allocation6 + $0x438] sm:$0xff]  ;;  %v2994_v4 = vpack.c.bf16 %v577_v62, %v573_v60  ;;  %v583_v7 = vld [vmem:[#allocation6 + $0x420] sm:$0xff] }
  0x63   :  { %2847 = vmatpush1.bf16.msra.mxu0 %v2846_v6  ;;  %v2868_v5 = vpack.c.bf16 %v584_v0, %v580_v63  ;;  %v579_v6 = vld [vmem:[#allocation6 + $0x400] sm:$0xff]  ;;  %v585_v10 = vld [vmem:[#allocation6 + $0x430] sm:$0xff]  ;;  %v588_v11 = vld [vmem:[#allocation6 + $0x448] sm:$0xff] }
  0x64   :  { %2975 = vmatpush1.bf16.msra.mxu1 %v2974_v8  ;;  %2849 = vmatprep.subr.bf16.mxu0 %v2848_v9  ;;  %v2996_v8 = vpack.c.bf16 %v586_v2, %v582_v1  ;;  %v581_v9 = vld [vmem:[#allocation6 + $0x410] sm:$0xff]  ;;  %v592_v12 = vld [vmem:[#allocation6 + $0x468] sm:$0xff]  ;;  %v2870_v14 = vpack.c.bf16 %v583_v7, %v579_v6  ;;  %v590_v15 = vld [vmem:[#allocation6 + $0x458] sm:$0xff] }
  0x65   :  { %2977 = vmatprep.subr.bf16.mxu1 %v2976_v13  ;;  %v323_v13 = vld [vmem:[#allocation3] sm:$0xff]  ;;  %v594_v16 = vld [vmem:[#allocation6 + $0x478] sm:$0xff]  ;;  %v2998_v17 = vpack.c.bf16 %v585_v10, %v581_v9  ;;  %v328_v18 = vld [vmem:[#allocation3 + $0x28] sm:$0xff] }
  0x66   :  { %v589_v22 = vld [vmem:[#allocation6 + $0x450] sm:$0xff]  ;;  %v3000_v23 = vpack.c.bf16 %v594_v16, %v590_v15  ;;  %v600_v26 = vld [vmem:[#allocation6 + $0x4a8] sm:$0xff]  ;;  %v327_v27 = vld [vmem:[#allocation3 + $0x20] sm:$0xff] }
  0x67   :  { %2851 = vmatpush1.bf16.msra.mxu0 %v2850_v19  ;;  %v2872_v19 = vpack.c.bf16 %v592_v12, %v588_v11  ;;  %v593_v24 = vld [vmem:[#allocation6 + $0x470] sm:$0xff]  ;;  %v598_v28 = vld [vmem:[#allocation6 + $0x498] sm:$0xff]  ;;  %v332_v30 = vld [vmem:[#allocation3 + $0x48] sm:$0xff] }
  0x68   :  { %2979 = vmatpush1.bf16.msra.mxu1 %v2978_v20  ;;  %2853 = vmatprep.subr.bf16.mxu0 %v2852_v21  ;;  %v587_v20 = vld [vmem:[#allocation6 + $0x440] sm:$0xff]  ;;  %v602_v29 = vld [vmem:[#allocation6 + $0x4b8] sm:$0xff]  ;;  %v597_v36 = vld [vmem:[#allocation6 + $0x490] sm:$0xff] }
  0x69   :  { %2981 = vmatprep.subr.bf16.mxu1 %v2980_v25  ;;  %v591_v21 = vld [vmem:[#allocation6 + $0x460] sm:$0xff]  ;;  %v596_v25 = vld [vmem:[#allocation6 + $0x488] sm:$0xff]  ;;  %v601_v38 = vld [vmem:[#allocation6 + $0x4b0] sm:$0xff] }
  0x6a   :  { %v595_v34 = vld [vmem:[#allocation6 + $0x480] sm:$0xff]  ;;  %v604_v39 = vld [vmem:[#allocation6 + $0x4c8] sm:$0xff]  ;;  %v606_v42 = vld [vmem:[#allocation6 + $0x4d8] sm:$0xff]  ;;  %v3006_v46 = vpack.c.bf16 %v601_v38, %v597_v36 }
  0x6b   :  { %2855 = vmatpush1.bf16.msra.mxu0 %v2854_v31  ;;  %v2874_v31 = vpack.c.bf16 %v591_v21, %v587_v20  ;;  %v599_v35 = vld [vmem:[#allocation6 + $0x4a0] sm:$0xff]  ;;  %v608_v40 = vld [vmem:[#allocation6 + $0x4e8] sm:$0xff]  ;;  %v605_v50 = vld [vmem:[#allocation6 + $0x4d0] sm:$0xff] }
  0x6c   :  { %2983 = vmatpush1.bf16.msra.mxu1 %v2982_v32  ;;  %2857 = vmatprep.subr.bf16.mxu0 %v2856_v33  ;;  %v3002_v32 = vpack.c.bf16 %v593_v24, %v589_v22  ;;  %v2876_v33 = vpack.c.bf16 %v600_v26, %v596_v25  ;;  %v331_v41 = vld [vmem:[#allocation3 + $0x40] sm:$0xff]  ;;  %v2880_v47 = vpack.c.bf16 %v608_v40, %v604_v39  ;;  %v609_v52 = vld [vmem:[#allocation6 + $0x4f0] sm:$0xff]  ;;  %v612_v53 = vld [vmem:[#allocation6 + $0x508] sm:$0xff] }
  0x6d   :  { %2985 = vmatprep.subr.bf16.mxu1 %v2984_v37  ;;  %v3004_v37 = vpack.c.bf16 %v602_v29, %v598_v28  ;;  %v603_v48 = vld [vmem:[#allocation6 + $0x4c0] sm:$0xff]  ;;  %v616_v54 = vld [vmem:[#allocation6 + $0x528] sm:$0xff]  ;;  %v3010_v60 = vpack.c.bf16 %v609_v52, %v605_v50  ;;  %v613_v0 = vld [vmem:[#allocation6 + $0x510] sm:$0xff] }
  0x6e   :  { %v340_v58 = vld [vmem:[#allocation3 + $0x88] sm:$0xff]  ;;  %v611_v62 = vld [vmem:[#allocation6 + $0x500] sm:$0xff]  ;;  %v617_v2 = vld [vmem:[#allocation6 + $0x530] sm:$0xff] }
  0x6f   :  { %2859 = vmatpush1.bf16.msra.mxu0 %v2858_v43  ;;  %v610_v43 = vld [vmem:[#allocation6 + $0x4f8] sm:$0xff]  ;;  %v615_v63 = vld [vmem:[#allocation6 + $0x520] sm:$0xff]  ;;  %v3014_v10 = vpack.c.bf16 %v617_v2, %v613_v0  ;;  %v625_v16 = vld [vmem:[#allocation6 + $0x570] sm:$0xff] }
  0x70   :  { %2987 = vmatpush1.bf16.msra.mxu1 %v2986_v44  ;;  %2861 = vmatprep.subr.bf16.mxu0 %v2860_v45  ;;  %v336_v44 = vld [vmem:[#allocation3 + $0x68] sm:$0xff]  ;;  %v2878_v45 = vpack.c.bf16 %v599_v35, %v595_v34  ;;  %v3008_v51 = vpack.c.bf16 %v610_v43, %v606_v42  ;;  %v622_v6 = vld [vmem:[#allocation6 + $0x558] sm:$0xff]  ;;  %v2886_v9 = vpack.c.bf16 %v615_v63, %v611_v62  ;;  %v619_v12 = vld [vmem:[#allocation6 + $0x540] sm:$0xff] }
  0x71   :  { %2989 = vmatprep.subr.bf16.mxu1 %v2988_v49  ;;  %v607_v49 = vld [vmem:[#allocation6 + $0x4e0] sm:$0xff]  ;;  %v626_v7 = vld [vmem:[#allocation6 + $0x578] sm:$0xff]  ;;  %v348_v22 = vld [vmem:[#allocation3 + $0xc8] sm:$0xff] }
  0x72   :  { %v2882_v59 = vpack.c.bf16 %v607_v49, %v603_v48  ;;  %v3016_v15 = vpack.c.bf16 %v626_v7, %v622_v6  ;;  %v630_v20 = vld [vmem:[#allocation6 + $0x598] sm:$0xff]  ;;  %v627_v26 = vld [vmem:[#allocation6 + $0x580] sm:$0xff]  ;;  %v629_v28 = vld [vmem:[#allocation6 + $0x590] sm:$0xff] }
  0x73   :  { %2863 = vmatpush1.bf16.msra.mxu0 %v2862_v55  ;;  %v335_v55 = vld [vmem:[#allocation3 + $0x60] sm:$0xff]  ;;  %v634_v21 = vld [vmem:[#allocation6 + $0x5b8] sm:$0xff]  ;;  %v352_v36 = vld [vmem:[#allocation3 + $0xe8] sm:$0xff] }
  0x74   :  { %2991 = vmatpush1.bf16.msra.mxu1 %v2990_v56  ;;  %2865 = vmatprep.subr.bf16.mxu0 %v2864_v57  ;;  %v614_v56 = vld [vmem:[#allocation6 + $0x518] sm:$0xff]  ;;  %v3020_v29 = vpack.c.bf16 %v634_v21, %v630_v20  ;;  %v635_v40 = vld [vmem:[#allocation6 + $0x5c0] sm:$0xff]  ;;  %v637_v42 = vld [vmem:[#allocation6 + $0x5d0] sm:$0xff] }
  0x75   :  { %2993 = vmatprep.subr.bf16.mxu1 %v2992_v61  ;;  %v618_v57 = vld [vmem:[#allocation6 + $0x538] sm:$0xff]  ;;  %v2884_v61 = vpack.c.bf16 %v616_v54, %v612_v53  ;;  %v356_v50 = vld [vmem:[#allocation3 + $0x108] sm:$0xff]  ;;  %v643_v54 = vld [vmem:[#allocation6 + $0x600] sm:$0xff] }
  0x76   :  { %v3012_v1 = vpack.c.bf16 %v618_v57, %v614_v56  ;;  %v638_v34 = vld [vmem:[#allocation6 + $0x5d8] sm:$0xff]  ;;  %v645_v56 = vld [vmem:[#allocation6 + $0x610] sm:$0xff]  ;;  %v360_v0 = vld [vmem:[#allocation3 + $0x128] sm:$0xff] }
  0x77   :  { %2867 = vmatpush1.bf16.msra.mxu0 %v2866_v3  ;;  %v620_v3 = vld [vmem:[#allocation6 + $0x548] sm:$0xff]  ;;  %v642_v35 = vld [vmem:[#allocation6 + $0x5f8] sm:$0xff]  ;;  %v653_v6 = vld [vmem:[#allocation6 + $0x650] sm:$0xff] }
  0x78   :  { %2995 = vmatpush1.bf16.msra.mxu1 %v2994_v4  ;;  %2869 = vmatprep.subr.bf16.mxu0 %v2868_v5  ;;  %v624_v4 = vld [vmem:[#allocation6 + $0x568] sm:$0xff]  ;;  %v339_v5 = vld [vmem:[#allocation3 + $0x80] sm:$0xff]  ;;  %v3024_v43 = vpack.c.bf16 %v642_v35, %v638_v34  ;;  %v646_v48 = vld [vmem:[#allocation6 + $0x618] sm:$0xff] }
  0x79   :  { %2997 = vmatprep.subr.bf16.mxu1 %v2996_v8  ;;  %v344_v8 = vld [vmem:[#allocation3 + $0xa8] sm:$0xff]  ;;  %v2888_v11 = vpack.c.bf16 %v624_v4, %v620_v3  ;;  %v650_v49 = vld [vmem:[#allocation6 + $0x638] sm:$0xff]  ;;  %v651_v4 = vld [vmem:[#allocation6 + $0x640] sm:$0xff] }
  0x7a   :  { %772 = vmatmul.mubr.f32.vlgmr.msra.gmra.mrb[0].mxu0 %v323_v13  ;;  %v3028_v57 = vpack.c.bf16 %v650_v49, %v646_v48  ;;  %v654_v62 = vld [vmem:[#allocation6 + $0x658] sm:$0xff]  ;;  %v661_v20 = vld [vmem:[#allocation6 + $0x690] sm:$0xff] }
  0x7b   :  { %1286 = vmatmul.mubr.f32.vlgmr.msra.gmra.mrb[0].mxu1 %v323_v13  ;;  %2871 = vmatpush1.bf16.msra.mxu0 %v2870_v14  ;;  %v623_v13 = vld [vmem:[#allocation6 + $0x560] sm:$0xff]  ;;  %v621_v14 = vld [vmem:[#allocation6 + $0x550] sm:$0xff]  ;;  %v658_v63 = vld [vmem:[#allocation6 + $0x678] sm:$0xff] }
  0x7c   :  { %2999 = vmatpush1.bf16.msra.mxu1 %v2998_v17  ;;  %777 = vmatprep.mubr.f32.mxu0 %v328_v18  ;;  %v628_v17 = vld [vmem:[#allocation6 + $0x588] sm:$0xff]  ;;  %v3018_v24 = vpack.c.bf16 %v625_v16, %v621_v14  ;;  %v3032_v7 = vpack.c.bf16 %v658_v63, %v654_v62  ;;  %v669_v34 = vld [vmem:[#allocation6 + $0x6d0] sm:$0xff] }
  0x7d   :  { %1291 = vmatprep.mubr.f32.mxu1 %v328_v18  ;;  %2873 = vmatprep.subr.bf16.mxu0 %v2872_v19  ;;  %v632_v18 = vld [vmem:[#allocation6 + $0x5a8] sm:$0xff]  ;;  %v343_v19 = vld [vmem:[#allocation3 + $0xa0] sm:$0xff]  ;;  %v677_v48 = vld [vmem:[#allocation6 + $0x710] sm:$0xff] }
  0x7e   :  { %778 = vmatmul.mubr.f32.gmra.mrb[2].mxu0 %v327_v27  ;;  %3001 = vmatprep.subr.bf16.mxu1 %v3000_v23  ;;  %v2890_v23 = vpack.c.bf16 %v623_v13, %v619_v12  ;;  %v2892_v25 = vpack.c.bf16 %v632_v18, %v628_v17  ;;  %v662_v12 = vld [vmem:[#allocation6 + $0x698] sm:$0xff]  ;;  %v364_v14 = vld [vmem:[#allocation3 + $0x148] sm:$0xff]  ;;  %v659_v18 = vld [vmem:[#allocation6 + $0x680] sm:$0xff] }
  0x7f   :  { %1292 = vmatmul.mubr.f32.gmra.mrb[2].mxu1 %v327_v27  ;;  %783 = vmatprep.mubr.f32.mxu0 %v332_v30  ;;  %v631_v27 = vld [vmem:[#allocation6 + $0x5a0] sm:$0xff]  ;;  %v666_v13 = vld [vmem:[#allocation6 + $0x6b8] sm:$0xff]  ;;  %v685_v62 = vld [vmem:[#allocation6 + $0x750] sm:$0xff] }
  0x80   :  { %1297 = vmatprep.mubr.f32.mxu1 %v332_v30  ;;  %2875 = vmatpush1.bf16.msra.mxu0 %v2874_v31  ;;  %v633_v30 = vld [vmem:[#allocation6 + $0x5b0] sm:$0xff]  ;;  %v636_v31 = vld [vmem:[#allocation6 + $0x5c8] sm:$0xff]  ;;  %v3036_v21 = vpack.c.bf16 %v666_v13, %v662_v12 }
  0x81   :  { %3003 = vmatpush1.bf16.msra.mxu1 %v3002_v32  ;;  %2877 = vmatprep.subr.bf16.mxu0 %v2876_v33  ;;  %v640_v32 = vld [vmem:[#allocation6 + $0x5e8] sm:$0xff]  ;;  %v347_v33 = vld [vmem:[#allocation3 + $0xc0] sm:$0xff]  ;;  %v3022_v38 = vpack.c.bf16 %v633_v30, %v629_v28  ;;  %v693_v12 = vld [vmem:[#allocation6 + $0x790] sm:$0xff] }
  0x82   :  { %784 = vmatmul.mubr.f32.gmra.mrb[4].mxu0 %v331_v41  ;;  %3005 = vmatprep.subr.bf16.mxu1 %v3004_v37  ;;  %v2894_v37 = vpack.c.bf16 %v631_v27, %v627_v26  ;;  %v2896_v39 = vpack.c.bf16 %v640_v32, %v636_v31  ;;  %v670_v26 = vld [vmem:[#allocation6 + $0x6d8] sm:$0xff]  ;;  %v368_v28 = vld [vmem:[#allocation3 + $0x168] sm:$0xff]  ;;  %v667_v32 = vld [vmem:[#allocation6 + $0x6c0] sm:$0xff] }
  0x83   :  { %1298 = vmatmul.mubr.f32.gmra.mrb[4].mxu1 %v331_v41  ;;  %789 = vmatprep.mubr.f32.mxu0 %v336_v44  ;;  %v639_v41 = vld [vmem:[#allocation6 + $0x5e0] sm:$0xff]  ;;  %v674_v27 = vld [vmem:[#allocation6 + $0x6f8] sm:$0xff] }
  0x84   :  { %1303 = vmatprep.mubr.f32.mxu1 %v336_v44  ;;  %2879 = vmatpush1.bf16.msra.mxu0 %v2878_v45  ;;  %v641_v44 = vld [vmem:[#allocation6 + $0x5f0] sm:$0xff]  ;;  %v644_v45 = vld [vmem:[#allocation6 + $0x608] sm:$0xff]  ;;  %v3040_v35 = vpack.c.bf16 %v674_v27, %v670_v26 }
  0x85   :  { %3007 = vmatpush1.bf16.msra.mxu1 %v3006_v46  ;;  %2881 = vmatprep.subr.bf16.mxu0 %v2880_v47  ;;  %v648_v46 = vld [vmem:[#allocation6 + $0x628] sm:$0xff]  ;;  %v351_v47 = vld [vmem:[#allocation3 + $0xe0] sm:$0xff]  ;;  %v3026_v52 = vpack.c.bf16 %v641_v44, %v637_v42  ;;  %v701_v27 = vld [vmem:[#allocation6 + $0x7d0] sm:$0xff] }
  0x86   :  { %790 = vmatmul.mubr.f32.gmra.mrb[6].mxu0 %v335_v55  ;;  %3009 = vmatprep.subr.bf16.mxu1 %v3008_v51  ;;  %v2898_v51 = vpack.c.bf16 %v639_v41, %v635_v40  ;;  %v2900_v53 = vpack.c.bf16 %v648_v46, %v644_v45  ;;  %v678_v40 = vld [vmem:[#allocation6 + $0x718] sm:$0xff]  ;;  %v372_v42 = vld [vmem:[#allocation3 + $0x188] sm:$0xff]  ;;  %v675_v46 = vld [vmem:[#allocation6 + $0x700] sm:$0xff] }
  0x87   :  { %1304 = vmatmul.mubr.f32.gmra.mrb[6].mxu1 %v335_v55  ;;  %795 = vmatprep.mubr.f32.mxu0 %v340_v58  ;;  %v647_v55 = vld [vmem:[#allocation6 + $0x620] sm:$0xff]  ;;  %v682_v41 = vld [vmem:[#allocation6 + $0x738] sm:$0xff] }
  0x88   :  { %1309 = vmatprep.mubr.f32.mxu1 %v340_v58  ;;  %2883 = vmatpush1.bf16.msra.mxu0 %v2882_v59  ;;  %v649_v58 = vld [vmem:[#allocation6 + $0x630] sm:$0xff]  ;;  %v652_v59 = vld [vmem:[#allocation6 + $0x648] sm:$0xff]  ;;  %v3044_v49 = vpack.c.bf16 %v682_v41, %v678_v40  ;;  %v403_v41 = vld [vmem:[#allocation3 + $0x280] sm:$0xff] }
  0x89   :  { %3011 = vmatpush1.bf16.msra.mxu1 %v3010_v60  ;;  %2885 = vmatprep.subr.bf16.mxu0 %v2884_v61  ;;  %v656_v60 = vld [vmem:[#allocation6 + $0x668] sm:$0xff]  ;;  %v355_v61 = vld [vmem:[#allocation3 + $0x100] sm:$0xff]  ;;  %v3030_v2 = vpack.c.bf16 %v649_v58, %v645_v56 }
  0x8a   :  { %796 = vmatmul.mubr.f32.gmra.mrb[8].mxu0 %v339_v5  ;;  %3013 = vmatprep.subr.bf16.mxu1 %v3012_v1  ;;  %v2902_v1 = vpack.c.bf16 %v647_v55, %v643_v54  ;;  %v2904_v3 = vpack.c.bf16 %v656_v60, %v652_v59  ;;  %v686_v54 = vld [vmem:[#allocation6 + $0x758] sm:$0xff]  ;;  %v376_v56 = vld [vmem:[#allocation3 + $0x1a8] sm:$0xff]  ;;  %v683_v60 = vld [vmem:[#allocation6 + $0x740] sm:$0xff] }
  0x8b   :  { %1310 = vmatmul.mubr.f32.gmra.mrb[8].mxu1 %v339_v5  ;;  %801 = vmatprep.mubr.f32.mxu0 %v344_v8  ;;  %v655_v5 = vld [vmem:[#allocation6 + $0x660] sm:$0xff]  ;;  %v690_v55 = vld [vmem:[#allocation6 + $0x778] sm:$0xff]  ;;  %v404_v40 = vld [vmem:[#allocation3 + $0x288] sm:$0xff] }
  0x8c   :  { %1315 = vmatprep.mubr.f32.mxu1 %v344_v8  ;;  %2887 = vmatpush1.bf16.msra.mxu0 %v2886_v9  ;;  %v657_v8 = vld [vmem:[#allocation6 + $0x670] sm:$0xff]  ;;  %v660_v9 = vld [vmem:[#allocation6 + $0x688] sm:$0xff]  ;;  %v3048_v63 = vpack.c.bf16 %v690_v55, %v686_v54  ;;  %v431_v55 = vld [vmem:[#allocation3 + $0x360] sm:$0xff] }
  0x8d   :  { %3015 = vmatpush1.bf16.msra.mxu1 %v3014_v10  ;;  %2889 = vmatprep.subr.bf16.mxu0 %v2888_v11  ;;  %v664_v10 = vld [vmem:[#allocation6 + $0x6a8] sm:$0xff]  ;;  %v359_v11 = vld [vmem:[#allocation3 + $0x120] sm:$0xff]  ;;  %v3034_v16 = vpack.c.bf16 %v657_v8, %v653_v6 }
  0x8e   :  { %802 = vmatmul.mubr.f32.gmra.mrb[10].mxu0 %v343_v19  ;;  %3017 = vmatprep.subr.bf16.mxu1 %v3016_v15  ;;  %v2906_v15 = vpack.c.bf16 %v655_v5, %v651_v4  ;;  %v2908_v17 = vpack.c.bf16 %v664_v10, %v660_v9  ;;  %v694_v4 = vld [vmem:[#allocation6 + $0x798] sm:$0xff]  ;;  %v380_v6 = vld [vmem:[#allocation3 + $0x1c8] sm:$0xff]  ;;  %v691_v10 = vld [vmem:[#allocation6 + $0x780] sm:$0xff] }
  0x8f   :  { %1316 = vmatmul.mubr.f32.gmra.mrb[10].mxu1 %v343_v19  ;;  %807 = vmatprep.mubr.f32.mxu0 %v348_v22  ;;  %v663_v19 = vld [vmem:[#allocation6 + $0x6a0] sm:$0xff]  ;;  %v698_v5 = vld [vmem:[#allocation6 + $0x7b8] sm:$0xff]  ;;  %v432_v54 = vld [vmem:[#allocation3 + $0x368] sm:$0xff] }
  0x90   :  { %1321 = vmatprep.mubr.f32.mxu1 %v348_v22  ;;  %2891 = vmatpush1.bf16.msra.mxu0 %v2890_v23  ;;  %v665_v22 = vld [vmem:[#allocation6 + $0x6b0] sm:$0xff]  ;;  %v668_v23 = vld [vmem:[#allocation6 + $0x6c8] sm:$0xff]  ;;  %v3052_v13 = vpack.c.bf16 %v698_v5, %v694_v4  ;;  %v334_v4 = vld [vmem:[#allocation3 + $0x58] sm:$0xff] }
  0x91   :  { %3019 = vmatpush1.bf16.msra.mxu1 %v3018_v24  ;;  %2893 = vmatprep.subr.bf16.mxu0 %v2892_v25  ;;  %v672_v24 = vld [vmem:[#allocation6 + $0x6e8] sm:$0xff]  ;;  %v363_v25 = vld [vmem:[#allocation3 + $0x140] sm:$0xff]  ;;  %v3038_v30 = vpack.c.bf16 %v665_v22, %v661_v20  ;;  %v333_v5 = vld [vmem:[#allocation3 + $0x50] sm:$0xff] }
  0x92   :  { %808 = vmatmul.mubr.f32.gmra.mrb[12].mxu0 %v347_v33  ;;  %3021 = vmatprep.subr.bf16.mxu1 %v3020_v29  ;;  %v2910_v29 = vpack.c.bf16 %v663_v19, %v659_v18  ;;  %v2912_v31 = vpack.c.bf16 %v672_v24, %v668_v23  ;;  %v702_v18 = vld [vmem:[#allocation6 + $0x7d8] sm:$0xff]  ;;  %v384_v20 = vld [vmem:[#allocation3 + $0x1e8] sm:$0xff]  ;;  %v699_v24 = vld [vmem:[#allocation6 + $0x7c0] sm:$0xff] }
  0x93   :  { %1322 = vmatmul.mubr.f32.gmra.mrb[12].mxu1 %v347_v33  ;;  %813 = vmatprep.mubr.f32.mxu0 %v352_v36  ;;  %v671_v33 = vld [vmem:[#allocation6 + $0x6e0] sm:$0xff]  ;;  %v706_v19 = vld [vmem:[#allocation6 + $0x7f8] sm:$0xff] }
  0x94   :  { %1327 = vmatprep.mubr.f32.mxu1 %v352_v36  ;;  %2895 = vmatpush1.bf16.msra.mxu0 %v2894_v37  ;;  %v673_v36 = vld [vmem:[#allocation6 + $0x6f0] sm:$0xff]  ;;  %v676_v37 = vld [vmem:[#allocation6 + $0x708] sm:$0xff]  ;;  %v3056_v26 = vpack.c.bf16 %v706_v19, %v702_v18  ;;  %v362_v18 = vld [vmem:[#allocation3 + $0x138] sm:$0xff] }
  0x95   :  { %3023 = vmatpush1.bf16.msra.mxu1 %v3022_v38  ;;  %2897 = vmatprep.subr.bf16.mxu0 %v2896_v39  ;;  %v680_v38 = vld [vmem:[#allocation6 + $0x728] sm:$0xff]  ;;  %v367_v39 = vld [vmem:[#allocation3 + $0x160] sm:$0xff]  ;;  %v3042_v44 = vpack.c.bf16 %v673_v36, %v669_v34  ;;  %v361_v19 = vld [vmem:[#allocation3 + $0x130] sm:$0xff] }
  0x96   :  { %814 = vmatmul.mubr.f32.gmra.mrb[14].mxu0 %v351_v47  ;;  %3025 = vmatprep.subr.bf16.mxu1 %v3024_v43  ;;  %v2914_v43 = vpack.c.bf16 %v671_v33, %v667_v32  ;;  %v2916_v45 = vpack.c.bf16 %v680_v38, %v676_v37  ;;  %v387_v33 = vld [vmem:[#allocation3 + $0x200] sm:$0xff]  ;;  %v392_v34 = vld [vmem:[#allocation3 + $0x228] sm:$0xff] }
  0x97   :  { %1328 = vmatmul.mubr.f32.gmra.mrb[14].mxu1 %v351_v47  ;;  %819 = vmatprep.mubr.f32.mxu0 %v356_v50  ;;  %v679_v47 = vld [vmem:[#allocation6 + $0x720] sm:$0xff]  ;;  %v396_v36 = vld [vmem:[#allocation3 + $0x248] sm:$0xff] }
  0x98   :  { %1333 = vmatprep.mubr.f32.mxu1 %v356_v50  ;;  %2899 = vmatpush1.bf16.msra.mxu0 %v2898_v51  ;;  %v681_v50 = vld [vmem:[#allocation6 + $0x730] sm:$0xff]  ;;  %v684_v51 = vld [vmem:[#allocation6 + $0x748] sm:$0xff]  ;;  %v395_v37 = vld [vmem:[#allocation3 + $0x240] sm:$0xff] }
  0x99   :  { %3027 = vmatpush1.bf16.msra.mxu1 %v3026_v52  ;;  %2901 = vmatprep.subr.bf16.mxu0 %v2900_v53  ;;  %v688_v52 = vld [vmem:[#allocation6 + $0x768] sm:$0xff]  ;;  %v371_v53 = vld [vmem:[#allocation3 + $0x180] sm:$0xff]  ;;  %v3046_v58 = vpack.c.bf16 %v681_v50, %v677_v48 }
  0x9a   :  { %820 = vmatmul.mubr.f32.gmra.mrb[16].mxu0 %v355_v61  ;;  %3029 = vmatprep.subr.bf16.mxu1 %v3028_v57  ;;  %v2918_v57 = vpack.c.bf16 %v679_v47, %v675_v46  ;;  %v2920_v59 = vpack.c.bf16 %v688_v52, %v684_v51  ;;  %v400_v38 = vld [vmem:[#allocation3 + $0x268] sm:$0xff]  ;;  %v415_v47 = vld [vmem:[#allocation3 + $0x2e0] sm:$0xff] }
  0x9b   :  { %1334 = vmatmul.mubr.f32.gmra.mrb[16].mxu1 %v355_v61  ;;  %825 = vmatprep.mubr.f32.mxu0 %v360_v0  ;;  %v687_v61 = vld [vmem:[#allocation6 + $0x760] sm:$0xff]  ;;  %v416_v46 = vld [vmem:[#allocation3 + $0x2e8] sm:$0xff] }
  0x9c   :  { %1339 = vmatprep.mubr.f32.mxu1 %v360_v0  ;;  %2903 = vmatpush1.bf16.msra.mxu0 %v2902_v1  ;;  %v689_v0 = vld [vmem:[#allocation6 + $0x770] sm:$0xff]  ;;  %v692_v1 = vld [vmem:[#allocation6 + $0x788] sm:$0xff]  ;;  %v423_v51 = vld [vmem:[#allocation3 + $0x320] sm:$0xff] }
  0x9d   :  { %3031 = vmatpush1.bf16.msra.mxu1 %v3030_v2  ;;  %2905 = vmatprep.subr.bf16.mxu0 %v2904_v3  ;;  %v696_v2 = vld [vmem:[#allocation6 + $0x7a8] sm:$0xff]  ;;  %v375_v3 = vld [vmem:[#allocation3 + $0x1a0] sm:$0xff]  ;;  %v3050_v8 = vpack.c.bf16 %v689_v0, %v685_v62  ;;  %v326_v0 = vld [vmem:[#allocation3 + $0x18] sm:$0xff] }
  0x9e   :  { %826 = vmatmul.mubr.f32.gmra.mrb[18].mxu0 %v359_v11  ;;  %3033 = vmatprep.subr.bf16.mxu1 %v3032_v7  ;;  %v2922_v7 = vpack.c.bf16 %v687_v61, %v683_v60  ;;  %v2924_v9 = vpack.c.bf16 %v696_v2, %v692_v1  ;;  %v420_v48 = vld [vmem:[#allocation3 + $0x308] sm:$0xff]  ;;  %v443_v61 = vld [vmem:[#allocation3 + $0x3c0] sm:$0xff]  ;;  %v325_v1 = vld [vmem:[#allocation3 + $0x10] sm:$0xff] }
  0x9f   :  { %1340 = vmatmul.mubr.f32.gmra.mrb[18].mxu1 %v359_v11  ;;  %831 = vmatprep.mubr.f32.mxu0 %v364_v14  ;;  %v695_v11 = vld [vmem:[#allocation6 + $0x7a0] sm:$0xff]  ;;  %v424_v50 = vld [vmem:[#allocation3 + $0x328] sm:$0xff]  ;;  %v330_v2 = vld [vmem:[#allocation3 + $0x38] sm:$0xff] }
  0xa0   :  { %1345 = vmatprep.mubr.f32.mxu1 %v364_v14  ;;  %2907 = vmatpush1.bf16.msra.mxu0 %v2906_v15  ;;  %v697_v14 = vld [vmem:[#allocation6 + $0x7b0] sm:$0xff]  ;;  %v700_v15 = vld [vmem:[#allocation6 + $0x7c8] sm:$0xff] }
  0xa1   :  { %3035 = vmatpush1.bf16.msra.mxu1 %v3034_v16  ;;  %2909 = vmatprep.subr.bf16.mxu0 %v2908_v17  ;;  %v704_v16 = vld [vmem:[#allocation6 + $0x7e8] sm:$0xff]  ;;  %v379_v17 = vld [vmem:[#allocation3 + $0x1c0] sm:$0xff]  ;;  %v3054_v22 = vpack.c.bf16 %v697_v14, %v693_v12  ;;  %v350_v12 = vld [vmem:[#allocation3 + $0xd8] sm:$0xff] }
  0xa2   :  { %832 = vmatmul.mubr.f32.gmra.mrb[20].mxu0 %v363_v25  ;;  %3037 = vmatprep.subr.bf16.mxu1 %v3036_v21  ;;  %v2926_v21 = vpack.c.bf16 %v695_v11, %v691_v10  ;;  %v2928_v23 = vpack.c.bf16 %v704_v16, %v700_v15  ;;  %v428_v52 = vld [vmem:[#allocation3 + $0x348] sm:$0xff]  ;;  %v346_v10 = vld [vmem:[#allocation3 + $0xb8] sm:$0xff]  ;;  %v345_v11 = vld [vmem:[#allocation3 + $0xb0] sm:$0xff] }
  0xa3   :  { %1346 = vmatmul.mubr.f32.gmra.mrb[20].mxu1 %v363_v25  ;;  %837 = vmatprep.mubr.f32.mxu0 %v368_v28  ;;  %v703_v25 = vld [vmem:[#allocation6 + $0x7e0] sm:$0xff]  ;;  %v444_v60 = vld [vmem:[#allocation3 + $0x3c8] sm:$0xff]  ;;  %v354_v14 = vld [vmem:[#allocation3 + $0xf8] sm:$0xff] }
  0xa4   :  { %1351 = vmatprep.mubr.f32.mxu1 %v368_v28  ;;  %2911 = vmatpush1.bf16.msra.mxu0 %v2910_v29  ;;  %v705_v28 = vld [vmem:[#allocation6 + $0x7f0] sm:$0xff]  ;;  %v383_v29 = vld [vmem:[#allocation3 + $0x1e0] sm:$0xff]  ;;  %v448_v62 = vld [vmem:[#allocation3 + $0x3e8] sm:$0xff] }
  0xa5   :  { %3039 = vmatpush1.bf16.msra.mxu1 %v3038_v30  ;;  %2913 = vmatprep.subr.bf16.mxu0 %v2912_v31  ;;  %v388_v30 = vld [vmem:[#allocation3 + $0x208] sm:$0xff]  ;;  %v2930_v31 = vpack.c.bf16 %v703_v25, %v699_v24  ;;  %v3058_v32 = vpack.c.bf16 %v705_v28, %v701_v27  ;;  %v353_v15 = vld [vmem:[#allocation3 + $0xf0] sm:$0xff]  ;;  %v358_v16 = vld [vmem:[#allocation3 + $0x118] sm:$0xff] }
  0xa6   :  { %838 = vmatmul.mubr.f32.gmra.mrb[22].mxu0 %v367_v39  ;;  %3041 = vmatprep.subr.bf16.mxu1 %v3040_v35  ;;  %v391_v35 = vld [vmem:[#allocation3 + $0x220] sm:$0xff]  ;;  %v374_v24 = vld [vmem:[#allocation3 + $0x198] sm:$0xff]  ;;  %v373_v25 = vld [vmem:[#allocation3 + $0x190] sm:$0xff] }
  0xa7   :  { %1352 = vmatmul.mubr.f32.gmra.mrb[22].mxu1 %v367_v39  ;;  %843 = vmatprep.mubr.f32.mxu0 %v372_v42  ;;  %v399_v39 = vld [vmem:[#allocation3 + $0x260] sm:$0xff]  ;;  %v377_v27 = vld [vmem:[#allocation3 + $0x1b0] sm:$0xff]  ;;  %v382_v28 = vld [vmem:[#allocation3 + $0x1d8] sm:$0xff] }
  0xa8   :  { %1357 = vmatprep.mubr.f32.mxu1 %v372_v42  ;;  %2915 = vmatpush1.bf16.msra.mxu0 %v2914_v43  ;;  %v408_v42 = vld [vmem:[#allocation3 + $0x2a8] sm:$0xff]  ;;  %v407_v43 = vld [vmem:[#allocation3 + $0x2a0] sm:$0xff] }
  0xa9   :  { %3043 = vmatpush1.bf16.msra.mxu1 %v3042_v44  ;;  %2917 = vmatprep.subr.bf16.mxu0 %v2916_v45  ;;  %v412_v44 = vld [vmem:[#allocation3 + $0x2c8] sm:$0xff]  ;;  %v411_v45 = vld [vmem:[#allocation3 + $0x2c0] sm:$0xff] }
  0xaa   :  { %844 = vmatmul.mubr.f32.gmra.mrb[24].mxu0 %v371_v53  ;;  %3045 = vmatprep.subr.bf16.mxu1 %v3044_v49  ;;  %v419_v49 = vld [vmem:[#allocation3 + $0x300] sm:$0xff] }
  0xab   :  { %1358 = vmatmul.mubr.f32.gmra.mrb[24].mxu1 %v371_v53  ;;  %849 = vmatprep.mubr.f32.mxu0 %v376_v56  ;;  %v427_v53 = vld [vmem:[#allocation3 + $0x340] sm:$0xff] }
  0xac   :  { %1363 = vmatprep.mubr.f32.mxu1 %v376_v56  ;;  %2919 = vmatpush1.bf16.msra.mxu0 %v2918_v57  ;;  %v436_v56 = vld [vmem:[#allocation3 + $0x388] sm:$0xff]  ;;  %v435_v57 = vld [vmem:[#allocation3 + $0x380] sm:$0xff] }
  0xad   :  { %3047 = vmatpush1.bf16.msra.mxu1 %v3046_v58  ;;  %2921 = vmatprep.subr.bf16.mxu0 %v2920_v59  ;;  %v440_v58 = vld [vmem:[#allocation3 + $0x3a8] sm:$0xff]  ;;  %v439_v59 = vld [vmem:[#allocation3 + $0x3a0] sm:$0xff] }
  0xae   :  { %850 = vmatmul.mubr.f32.gmra.mrb[26].mxu0 %v375_v3  ;;  %3049 = vmatprep.subr.bf16.mxu1 %v3048_v63  ;;  %v447_v63 = vld [vmem:[#allocation3 + $0x3e0] sm:$0xff] }
  0xaf   :  { %1364 = vmatmul.mubr.f32.gmra.mrb[26].mxu1 %v375_v3  ;;  %855 = vmatprep.mubr.f32.mxu0 %v380_v6  ;;  %v329_v3 = vld [vmem:[#allocation3 + $0x30] sm:$0xff] }
  0xb0   :  { %1369 = vmatprep.mubr.f32.mxu1 %v380_v6  ;;  %2923 = vmatpush1.bf16.msra.mxu0 %v2922_v7  ;;  %v338_v6 = vld [vmem:[#allocation3 + $0x78] sm:$0xff]  ;;  %v337_v7 = vld [vmem:[#allocation3 + $0x70] sm:$0xff] }
  0xb1   :  { %3051 = vmatpush1.bf16.msra.mxu1 %v3050_v8  ;;  %2925 = vmatprep.subr.bf16.mxu0 %v2924_v9  ;;  %v342_v8 = vld [vmem:[#allocation3 + $0x98] sm:$0xff]  ;;  %v341_v9 = vld [vmem:[#allocation3 + $0x90] sm:$0xff] }
  0xb2   :  { %856 = vmatmul.mubr.f32.gmra.mrb[28].mxu0 %v379_v17  ;;  %3053 = vmatprep.subr.bf16.mxu1 %v3052_v13  ;;  %v349_v13 = vld [vmem:[#allocation3 + $0xd0] sm:$0xff] }
  0xb3   :  { %1370 = vmatmul.mubr.f32.gmra.mrb[28].mxu1 %v379_v17  ;;  %861 = vmatprep.mubr.f32.mxu0 %v384_v20  ;;  %v357_v17 = vld [vmem:[#allocation3 + $0x110] sm:$0xff] }
  0xb4   :  { %1375 = vmatprep.mubr.f32.mxu1 %v384_v20  ;;  %2927 = vmatpush1.bf16.msra.mxu0 %v2926_v21  ;;  %v366_v20 = vld [vmem:[#allocation3 + $0x158] sm:$0xff]  ;;  %v365_v21 = vld [vmem:[#allocation3 + $0x150] sm:$0xff] }
  0xb5   :  { %3055 = vmatpush1.bf16.msra.mxu1 %v3054_v22  ;;  %2929 = vmatprep.subr.bf16.mxu0 %v2928_v23  ;;  %v370_v22 = vld [vmem:[#allocation3 + $0x178] sm:$0xff]  ;;  %v369_v23 = vld [vmem:[#allocation3 + $0x170] sm:$0xff] }
  0xb6   :  { %862 = vmatmul.mubr.f32.gmra.mrb[30].mxu0 %v383_v29  ;;  %3057 = vmatprep.subr.bf16.mxu1 %v3056_v26  ;;  %v378_v26 = vld [vmem:[#allocation3 + $0x1b8] sm:$0xff] }
  0xb7   :  { %1376 = vmatmul.mubr.f32.gmra.mrb[30].mxu1 %v383_v29  ;;  %867 = vmatprep.mubr.f32.mxu0 %v388_v30  ;;  %v381_v29 = vld [vmem:[#allocation3 + $0x1d0] sm:$0xff] }
  0xb8   :  { %1381 = vmatprep.mubr.f32.mxu1 %v388_v30  ;;  %2931 = vmatpush1.bf16.msra.mxu0 %v2930_v31  ;;  %v386_v30 = vld [vmem:[#allocation3 + $0x1f8] sm:$0xff]  ;;  %v385_v31 = vld [vmem:[#allocation3 + $0x1f0] sm:$0xff] }
  0xb9   :  { %3059 = vmatpush1.bf16.msra.mxu1 %v3058_v32  ;;  %v390_v32 = vld [vmem:[#allocation3 + $0x218] sm:$0xff] }
  0xba   :  { %868 = vmatmul.mubr.f32.gmra.mrb[32].mxu0 %v387_v33 }
  0xbb   :  { %1382 = vmatmul.mubr.f32.gmra.mrb[32].mxu1 %v387_v33  ;;  %873 = vmatprep.mubr.f32.mxu0 %v392_v34  ;;  %v389_v33 = vld [vmem:[#allocation3 + $0x210] sm:$0xff] }
  0xbc   :  { %1387 = vmatprep.mubr.f32.mxu1 %v392_v34  ;;  %v394_v34 = vld [vmem:[#allocation3 + $0x238] sm:$0xff] }
  0xbe   :  { %874 = vmatmul.mubr.f32.gmra.mrb[34].mxu0 %v391_v35 }
  0xbf   :  { %1388 = vmatmul.mubr.f32.gmra.mrb[34].mxu1 %v391_v35  ;;  %879 = vmatprep.mubr.f32.mxu0 %v396_v36  ;;  %v393_v35 = vld [vmem:[#allocation3 + $0x230] sm:$0xff] }
  0xc0   :  { %1393 = vmatprep.mubr.f32.mxu1 %v396_v36  ;;  %v398_v36 = vld [vmem:[#allocation3 + $0x258] sm:$0xff] }
  0xc2   :  { %880 = vmatmul.mubr.f32.gmra.mrb[36].mxu0 %v395_v37 }
  0xc3   :  { %1394 = vmatmul.mubr.f32.gmra.mrb[36].mxu1 %v395_v37  ;;  %885 = vmatprep.mubr.f32.mxu0 %v400_v38  ;;  %v397_v37 = vld [vmem:[#allocation3 + $0x250] sm:$0xff] }
  0xc4   :  { %1399 = vmatprep.mubr.f32.mxu1 %v400_v38  ;;  %v402_v38 = vld [vmem:[#allocation3 + $0x278] sm:$0xff] }
  0xc6   :  { %886 = vmatmul.mubr.f32.gmra.mrb[38].mxu0 %v399_v39 }
  0xc7   :  { %1400 = vmatmul.mubr.f32.gmra.mrb[38].mxu1 %v399_v39  ;;  %891 = vmatprep.mubr.f32.mxu0 %v404_v40  ;;  %v401_v39 = vld [vmem:[#allocation3 + $0x270] sm:$0xff] }
  0xc8   :  { %1405 = vmatprep.mubr.f32.mxu1 %v404_v40  ;;  %v406_v40 = vld [vmem:[#allocation3 + $0x298] sm:$0xff] }
  0xca   :  { %892 = vmatmul.mubr.f32.gmra.mrb[40].mxu0 %v403_v41 }
  0xcb   :  { %1406 = vmatmul.mubr.f32.gmra.mrb[40].mxu1 %v403_v41  ;;  %897 = vmatprep.mubr.f32.mxu0 %v408_v42  ;;  %v405_v41 = vld [vmem:[#allocation3 + $0x290] sm:$0xff] }
  0xcc   :  { %1411 = vmatprep.mubr.f32.mxu1 %v408_v42  ;;  %v410_v42 = vld [vmem:[#allocation3 + $0x2b8] sm:$0xff] }
  0xce   :  { %898 = vmatmul.mubr.f32.gmra.mrb[42].mxu0 %v407_v43 }
  0xcf   :  { %1412 = vmatmul.mubr.f32.gmra.mrb[42].mxu1 %v407_v43  ;;  %903 = vmatprep.mubr.f32.mxu0 %v412_v44  ;;  %v409_v43 = vld [vmem:[#allocation3 + $0x2b0] sm:$0xff] }
  0xd0   :  { %1417 = vmatprep.mubr.f32.mxu1 %v412_v44  ;;  %v414_v44 = vld [vmem:[#allocation3 + $0x2d8] sm:$0xff] }
  0xd2   :  { %904 = vmatmul.mubr.f32.gmra.mrb[44].mxu0 %v411_v45 }
  0xd3   :  { %1418 = vmatmul.mubr.f32.gmra.mrb[44].mxu1 %v411_v45  ;;  %909 = vmatprep.mubr.f32.mxu0 %v416_v46  ;;  %v413_v45 = vld [vmem:[#allocation3 + $0x2d0] sm:$0xff] }
  0xd4   :  { %1423 = vmatprep.mubr.f32.mxu1 %v416_v46  ;;  %v418_v46 = vld [vmem:[#allocation3 + $0x2f8] sm:$0xff] }
  0xd6   :  { %910 = vmatmul.mubr.f32.gmra.mrb[46].mxu0 %v415_v47 }
  0xd7   :  { %1424 = vmatmul.mubr.f32.gmra.mrb[46].mxu1 %v415_v47  ;;  %915 = vmatprep.mubr.f32.mxu0 %v420_v48  ;;  %v417_v47 = vld [vmem:[#allocation3 + $0x2f0] sm:$0xff] }
  0xd8   :  { %1429 = vmatprep.mubr.f32.mxu1 %v420_v48  ;;  %v422_v48 = vld [vmem:[#allocation3 + $0x318] sm:$0xff] }
  0xda   :  { %916 = vmatmul.mubr.f32.gmra.mrb[48].mxu0 %v419_v49 }
  0xdb   :  { %1430 = vmatmul.mubr.f32.gmra.mrb[48].mxu1 %v419_v49  ;;  %921 = vmatprep.mubr.f32.mxu0 %v424_v50  ;;  %v421_v49 = vld [vmem:[#allocation3 + $0x310] sm:$0xff] }
  0xdc   :  { %1435 = vmatprep.mubr.f32.mxu1 %v424_v50  ;;  %v426_v50 = vld [vmem:[#allocation3 + $0x338] sm:$0xff] }
  0xde   :  { %922 = vmatmul.mubr.f32.gmra.mrb[50].mxu0 %v423_v51 }
  0xdf   :  { %1436 = vmatmul.mubr.f32.gmra.mrb[50].mxu1 %v423_v51  ;;  %927 = vmatprep.mubr.f32.mxu0 %v428_v52  ;;  %v425_v51 = vld [vmem:[#allocation3 + $0x330] sm:$0xff] }
  0xe0   :  { %1441 = vmatprep.mubr.f32.mxu1 %v428_v52  ;;  %v430_v52 = vld [vmem:[#allocation3 + $0x358] sm:$0xff] }
  0xe2   :  { %928 = vmatmul.mubr.f32.gmra.mrb[52].mxu0 %v427_v53 }
  0xe3   :  { %1442 = vmatmul.mubr.f32.gmra.mrb[52].mxu1 %v427_v53  ;;  %933 = vmatprep.mubr.f32.mxu0 %v432_v54  ;;  %v429_v53 = vld [vmem:[#allocation3 + $0x350] sm:$0xff] }
  0xe4   :  { %1447 = vmatprep.mubr.f32.mxu1 %v432_v54  ;;  %v434_v54 = vld [vmem:[#allocation3 + $0x378] sm:$0xff] }
  0xe6   :  { %934 = vmatmul.mubr.f32.gmra.mrb[54].mxu0 %v431_v55 }
  0xe7   :  { %1448 = vmatmul.mubr.f32.gmra.mrb[54].mxu1 %v431_v55  ;;  %939 = vmatprep.mubr.f32.mxu0 %v436_v56  ;;  %v433_v55 = vld [vmem:[#allocation3 + $0x370] sm:$0xff] }
  0xe8   :  { %1453 = vmatprep.mubr.f32.mxu1 %v436_v56  ;;  %v438_v56 = vld [vmem:[#allocation3 + $0x398] sm:$0xff] }
  0xea   :  { %940 = vmatmul.mubr.f32.gmra.mrb[56].mxu0 %v435_v57 }
  0xeb   :  { %1454 = vmatmul.mubr.f32.gmra.mrb[56].mxu1 %v435_v57  ;;  %945 = vmatprep.mubr.f32.mxu0 %v440_v58  ;;  %v437_v57 = vld [vmem:[#allocation3 + $0x390] sm:$0xff] }
  0xec   :  { %1459 = vmatprep.mubr.f32.mxu1 %v440_v58  ;;  %v442_v58 = vld [vmem:[#allocation3 + $0x3b8] sm:$0xff] }
  0xee   :  { %946 = vmatmul.mubr.f32.gmra.mrb[58].mxu0 %v439_v59 }
  0xef   :  { %1460 = vmatmul.mubr.f32.gmra.mrb[58].mxu1 %v439_v59  ;;  %951 = vmatprep.mubr.f32.mxu0 %v444_v60  ;;  %v441_v59 = vld [vmem:[#allocation3 + $0x3b0] sm:$0xff] }
  0xf0   :  { %1465 = vmatprep.mubr.f32.mxu1 %v444_v60  ;;  %v446_v60 = vld [vmem:[#allocation3 + $0x3d8] sm:$0xff] }
  0xf2   :  { %952 = vmatmul.mubr.f32.gmra.mrb[60].mxu0 %v443_v61 }
  0xf3   :  { %1466 = vmatmul.mubr.f32.gmra.mrb[60].mxu1 %v443_v61  ;;  %957 = vmatprep.mubr.f32.mxu0 %v448_v62  ;;  %v445_v61 = vld [vmem:[#allocation3 + $0x3d0] sm:$0xff] }
  0xf4   :  { %1471 = vmatprep.mubr.f32.mxu1 %v448_v62  ;;  %v450_v62 = vld [vmem:[#allocation3 + $0x3f8] sm:$0xff] }
  0xf6   :  { %958 = vmatmul.mubr.f32.gmra.mrb[62].mxu0 %v447_v63 }
  0xf7   :  { %1472 = vmatmul.mubr.f32.gmra.mrb[62].mxu1 %v447_v63  ;;  %1028 = vmatprep.mubr.f32.mxu0 %v326_v0  ;;  %v449_v63 = vld [vmem:[#allocation3 + $0x3f0] sm:$0xff] }
  0xf8   :  { %1542 = vmatprep.mubr.f32.mxu1 %v326_v0  ;;  %v2253_v0 = vlaneseq }
  0xfa   :  { %1029 = vmatmul.mubr.f32.vlgmr.msra.gmra.mrb[0].mxu0 %v325_v1 }
  0xfb   :  { %1543 = vmatmul.mubr.f32.vlgmr.msra.gmra.mrb[0].mxu1 %v325_v1  ;;  %1034 = vmatprep.mubr.f32.mxu0 %v330_v2  ;;  %v2254_v1 = vshrl.u32 %v2253_v0, 7 }
  0xfc   :  { %1548 = vmatprep.mubr.f32.mxu1 %v330_v2 }
  0xfd   :  { %v2255_v2 = vsub.s32 0, %v2254_v1 }
  0xfe   :  { %1035 = vmatmul.mubr.f32.gmra.mrb[2].mxu0 %v329_v3 }
  0xff   :  { %1549 = vmatmul.mubr.f32.gmra.mrb[2].mxu1 %v329_v3  ;;  %1040 = vmatprep.mubr.f32.mxu0 %v334_v4  ;;  %v2251_v3 = vld [vmem:[%s3667_s3] sm:$0xf] }
 0x100   :  { %1554 = vmatprep.mubr.f32.mxu1 %v334_v4  ;;  %v2263_v4 = vsub.s32 2, %v2254_v1 }
 0x102   :  { %1041 = vmatmul.mubr.f32.gmra.mrb[4].mxu0 %v333_v5 }
 0x103   :  { %1555 = vmatmul.mubr.f32.gmra.mrb[4].mxu1 %v333_v5  ;;  %1046 = vmatprep.mubr.f32.mxu0 %v338_v6  ;;  %v2259_v5 = vsub.s32 1, %v2254_v1 }
 0x104   :  { %1560 = vmatprep.mubr.f32.mxu1 %v338_v6  ;;  %v2267_v6 = vsub.s32 3, %v2254_v1 }
 0x106   :  { %1047 = vmatmul.mubr.f32.gmra.mrb[6].mxu0 %v337_v7 }
 0x107   :  { %1561 = vmatmul.mubr.f32.gmra.mrb[6].mxu1 %v337_v7  ;;  %1052 = vmatprep.mubr.f32.mxu0 %v342_v8  ;;  %v3380_v7 = vrot.slane %v2251_v3, %v2255_v2 }
 0x108   :  { %1566 = vmatprep.mubr.f32.mxu1 %v342_v8 }
 0x10a   :  { %1053 = vmatmul.mubr.f32.gmra.mrb[8].mxu0 %v341_v9 }
 0x10b   :  { %1567 = vmatmul.mubr.f32.gmra.mrb[8].mxu1 %v341_v9  ;;  %1058 = vmatprep.mubr.f32.mxu0 %v346_v10  ;;  %v3382_v9 = vrot.slane %v2251_v3, %v2263_v4 }
 0x10c   :  { %1572 = vmatprep.mubr.f32.mxu1 %v346_v10  ;;  %v3384_v10 = vrot.slane %v2251_v3, %v2259_v5  ;;  %v2006_v5 = vld [vmem:[#allocation8 + $0x58] sm:$0xff] }
 0x10e   :  { %1059 = vmatmul.mubr.f32.gmra.mrb[10].mxu0 %v345_v11 }
 0x10f   :  { %1573 = vmatmul.mubr.f32.gmra.mrb[10].mxu1 %v345_v11  ;;  %1064 = vmatprep.mubr.f32.mxu0 %v350_v12 }
 0x110   :  { %1578 = vmatprep.mubr.f32.mxu1 %v350_v12 }
 0x112   :  { %1065 = vmatmul.mubr.f32.gmra.mrb[12].mxu0 %v349_v13 }
 0x113   :  { %1579 = vmatmul.mubr.f32.gmra.mrb[12].mxu1 %v349_v13  ;;  %1070 = vmatprep.mubr.f32.mxu0 %v354_v14  ;;  %v3386_v13 = vrot.slane %v2251_v3, %v2267_v6 }
 0x114   :  { %1584 = vmatprep.mubr.f32.mxu1 %v354_v14  ;;  %v3391_v14 = vstv %s3664_s0  ;;  %s3294_s0 = smov [#allocation9]  }
 0x115   :  { %s2791_s3 = sshll.u32 %s3294_s0, 4  ;;  %s2792_s3 = int_to_ptr.vmem [resolvable:$true] %s2791_s3 }
 0x116   :  { %1071 = vmatmul.mubr.f32.gmra.mrb[14].mxu0 %v353_v15  ;;  %s3261_s9 = scalar_lea.vmem %s2792_s3, 16384  ;;  %p3266_p11 = scmp.lt.s32.totalorder %s2792_s3, %s2792_s3 }
 0x117   :  { %1585 = vmatmul.mubr.f32.gmra.mrb[14].mxu1 %v353_v15  ;;  %1076 = vmatprep.mubr.f32.mxu0 %v358_v16  ;;  %p3262_p10 = scmp.ne.s32.totalorder %s2792_s3, %s3261_s9  ;;  %p3267_p12 = scmp.lt.s32.totalorder %s3261_s9, %s3261_s9 }
 0x118   :  { %1590 = vmatprep.mubr.f32.mxu1 %v358_v16 }
 0x119   :  { %p3268_p13 = por %p3267_p12, %p3266_p11 }
 0x11a   :  { %1077 = vmatmul.mubr.f32.gmra.mrb[16].mxu0 %v357_v17 }
 0x11b   :  { %1591 = vmatmul.mubr.f32.gmra.mrb[16].mxu1 %v357_v17  ;;  %1082 = vmatprep.mubr.f32.mxu0 %v362_v18  ;;  %v1995_v17 = vld [vmem:[#allocation8] sm:$0xff]  ;;  %p3269_p0 = pnand %p3268_p13, %p3262_p10 }
 0x11c   :  { %1596 = vmatprep.mubr.f32.mxu1 %v362_v18 }
 0x11e   :  { %1083 = vmatmul.mubr.f32.gmra.mrb[18].mxu0 %v361_v19 }
 0x11f   :  { %1597 = vmatmul.mubr.f32.gmra.mrb[18].mxu1 %v361_v19  ;;  %1088 = vmatprep.mubr.f32.mxu0 %v366_v20 }
 0x120   :  { %1602 = vmatprep.mubr.f32.mxu1 %v366_v20 }
 0x122   :  { %1089 = vmatmul.mubr.f32.gmra.mrb[20].mxu0 %v365_v21 }
 0x123   :  { %1603 = vmatmul.mubr.f32.gmra.mrb[20].mxu1 %v365_v21  ;;  %1094 = vmatprep.mubr.f32.mxu0 %v370_v22 }
 0x124   :  { %1608 = vmatprep.mubr.f32.mxu1 %v370_v22  ;;  %v1997_v22 = vld [vmem:[#allocation8 + $0x10] sm:$0xff] }
 0x126   :  { %1095 = vmatmul.mubr.f32.gmra.mrb[22].mxu0 %v369_v23 }
 0x127   :  { %1609 = vmatmul.mubr.f32.gmra.mrb[22].mxu1 %v369_v23  ;;  %1100 = vmatprep.mubr.f32.mxu0 %v374_v24  ;;  %v1996_v23 = vld [vmem:[#allocation8 + $0x8] sm:$0xff] }
 0x128   :  { %1614 = vmatprep.mubr.f32.mxu1 %v374_v24 }
 0x12a   :  { %1101 = vmatmul.mubr.f32.gmra.mrb[24].mxu0 %v373_v25 }
 0x12b   :  { %1615 = vmatmul.mubr.f32.gmra.mrb[24].mxu1 %v373_v25  ;;  %1106 = vmatprep.mubr.f32.mxu0 %v378_v26 }
 0x12c   :  { %1620 = vmatprep.mubr.f32.mxu1 %v378_v26 }
 0x12e   :  { %1107 = vmatmul.mubr.f32.gmra.mrb[26].mxu0 %v377_v27 }
 0x12f   :  { %1621 = vmatmul.mubr.f32.gmra.mrb[26].mxu1 %v377_v27  ;;  %1112 = vmatprep.mubr.f32.mxu0 %v382_v28 }
 0x130   :  { %1626 = vmatprep.mubr.f32.mxu1 %v382_v28 }
 0x132   :  { %1113 = vmatmul.mubr.f32.gmra.mrb[28].mxu0 %v381_v29 }
 0x133   :  { %1627 = vmatmul.mubr.f32.gmra.mrb[28].mxu1 %v381_v29  ;;  %1118 = vmatprep.mubr.f32.mxu0 %v386_v30  ;;  %v1998_v29 = vld [vmem:[#allocation8 + $0x18] sm:$0xff] }
 0x134   :  { %1632 = vmatprep.mubr.f32.mxu1 %v386_v30 }
 0x136   :  { %1119 = vmatmul.mubr.f32.gmra.mrb[30].mxu0 %v385_v31 }
 0x137   :  { %1633 = vmatmul.mubr.f32.gmra.mrb[30].mxu1 %v385_v31  ;;  %1124 = vmatprep.mubr.f32.mxu0 %v390_v32 }
 0x138   :  { %1638 = vmatprep.mubr.f32.mxu1 %v390_v32 }
 0x13a   :  { %1125 = vmatmul.mubr.f32.gmra.mrb[32].mxu0 %v389_v33 }
 0x13b   :  { %1639 = vmatmul.mubr.f32.gmra.mrb[32].mxu1 %v389_v33  ;;  %1130 = vmatprep.mubr.f32.mxu0 %v394_v34 }
 0x13c   :  { %1644 = vmatprep.mubr.f32.mxu1 %v394_v34 }
 0x13e   :  { %1131 = vmatmul.mubr.f32.gmra.mrb[34].mxu0 %v393_v35 }
 0x13f   :  { %1645 = vmatmul.mubr.f32.gmra.mrb[34].mxu1 %v393_v35  ;;  %1136 = vmatprep.mubr.f32.mxu0 %v398_v36 }
 0x140   :  { %1650 = vmatprep.mubr.f32.mxu1 %v398_v36  ;;  %v1999_v36 = vld [vmem:[#allocation8 + $0x20] sm:$0xff] }
 0x142   :  { %1137 = vmatmul.mubr.f32.gmra.mrb[36].mxu0 %v397_v37 }
 0x143   :  { %1651 = vmatmul.mubr.f32.gmra.mrb[36].mxu1 %v397_v37  ;;  %1142 = vmatprep.mubr.f32.mxu0 %v402_v38 }
 0x144   :  { %1656 = vmatprep.mubr.f32.mxu1 %v402_v38 }
 0x146   :  { %1143 = vmatmul.mubr.f32.gmra.mrb[38].mxu0 %v401_v39 }
 0x147   :  { %1657 = vmatmul.mubr.f32.gmra.mrb[38].mxu1 %v401_v39  ;;  %1148 = vmatprep.mubr.f32.mxu0 %v406_v40 }
 0x148   :  { %1662 = vmatprep.mubr.f32.mxu1 %v406_v40 }
 0x14a   :  { %1149 = vmatmul.mubr.f32.gmra.mrb[40].mxu0 %v405_v41 }
 0x14b   :  { %1663 = vmatmul.mubr.f32.gmra.mrb[40].mxu1 %v405_v41  ;;  %1154 = vmatprep.mubr.f32.mxu0 %v410_v42 }
 0x14c   :  { %1668 = vmatprep.mubr.f32.mxu1 %v410_v42  ;;  %v2001_v42 = vld [vmem:[#allocation8 + $0x30] sm:$0xff] }
 0x14e   :  { %1155 = vmatmul.mubr.f32.gmra.mrb[42].mxu0 %v409_v43 }
 0x14f   :  { %1669 = vmatmul.mubr.f32.gmra.mrb[42].mxu1 %v409_v43  ;;  %1160 = vmatprep.mubr.f32.mxu0 %v414_v44  ;;  %v2000_v43 = vld [vmem:[#allocation8 + $0x28] sm:$0xff] }
 0x150   :  { %1674 = vmatprep.mubr.f32.mxu1 %v414_v44 }
 0x152   :  { %1161 = vmatmul.mubr.f32.gmra.mrb[44].mxu0 %v413_v45 }
 0x153   :  { %1675 = vmatmul.mubr.f32.gmra.mrb[44].mxu1 %v413_v45  ;;  %1166 = vmatprep.mubr.f32.mxu0 %v418_v46 }
 0x154   :  { %1680 = vmatprep.mubr.f32.mxu1 %v418_v46 }
 0x156   :  { %1167 = vmatmul.mubr.f32.gmra.mrb[46].mxu0 %v417_v47 }
 0x157   :  { %1681 = vmatmul.mubr.f32.gmra.mrb[46].mxu1 %v417_v47  ;;  %1172 = vmatprep.mubr.f32.mxu0 %v422_v48 }
 0x158   :  { %1686 = vmatprep.mubr.f32.mxu1 %v422_v48 }
 0x15a   :  { %1173 = vmatmul.mubr.f32.gmra.mrb[48].mxu0 %v421_v49 }
 0x15b   :  { %1687 = vmatmul.mubr.f32.gmra.mrb[48].mxu1 %v421_v49  ;;  %1178 = vmatprep.mubr.f32.mxu0 %v426_v50  ;;  %v2002_v49 = vld [vmem:[#allocation8 + $0x38] sm:$0xff] }
 0x15c   :  { %1692 = vmatprep.mubr.f32.mxu1 %v426_v50 }
 0x15e   :  { %1179 = vmatmul.mubr.f32.gmra.mrb[50].mxu0 %v425_v51 }
 0x15f   :  { %1693 = vmatmul.mubr.f32.gmra.mrb[50].mxu1 %v425_v51  ;;  %1184 = vmatprep.mubr.f32.mxu0 %v430_v52 }
 0x160   :  { %1698 = vmatprep.mubr.f32.mxu1 %v430_v52 }
 0x162   :  { %1185 = vmatmul.mubr.f32.gmra.mrb[52].mxu0 %v429_v53 }
 0x163   :  { %1699 = vmatmul.mubr.f32.gmra.mrb[52].mxu1 %v429_v53  ;;  %1190 = vmatprep.mubr.f32.mxu0 %v434_v54 }
 0x164   :  { %1704 = vmatprep.mubr.f32.mxu1 %v434_v54 }
 0x166   :  { %1191 = vmatmul.mubr.f32.gmra.mrb[54].mxu0 %v433_v55 }
 0x167   :  { %1705 = vmatmul.mubr.f32.gmra.mrb[54].mxu1 %v433_v55  ;;  %1196 = vmatprep.mubr.f32.mxu0 %v438_v56 }
 0x168   :  { %1710 = vmatprep.mubr.f32.mxu1 %v438_v56  ;;  %v2003_v56 = vld [vmem:[#allocation8 + $0x40] sm:$0xff] }
 0x16a   :  { %1197 = vmatmul.mubr.f32.gmra.mrb[56].mxu0 %v437_v57 }
 0x16b   :  { %1711 = vmatmul.mubr.f32.gmra.mrb[56].mxu1 %v437_v57  ;;  %1202 = vmatprep.mubr.f32.mxu0 %v442_v58 }
 0x16c   :  { %1716 = vmatprep.mubr.f32.mxu1 %v442_v58 }
 0x16e   :  { %1203 = vmatmul.mubr.f32.gmra.mrb[58].mxu0 %v441_v59 }
 0x16f   :  { %1717 = vmatmul.mubr.f32.gmra.mrb[58].mxu1 %v441_v59  ;;  %1208 = vmatprep.mubr.f32.mxu0 %v446_v60 }
 0x170   :  { %1722 = vmatprep.mubr.f32.mxu1 %v446_v60 }
 0x172   :  { %1209 = vmatmul.mubr.f32.gmra.mrb[60].mxu0 %v445_v61 }
 0x173   :  { %1723 = vmatmul.mubr.f32.gmra.mrb[60].mxu1 %v445_v61  ;;  %1214 = vmatprep.mubr.f32.mxu0 %v450_v62 }
 0x174   :  { %1728 = vmatprep.mubr.f32.mxu1 %v450_v62  ;;  %v2005_v62 = vld [vmem:[#allocation8 + $0x50] sm:$0xff] }
 0x176   :  { %1215 = vmatmul.mubr.f32.gmra.mrb[62].mxu0 %v449_v63 }
 0x177   :  { %1729 = vmatmul.mubr.f32.gmra.mrb[62].mxu1 %v449_v63  ;;  %v2004_v63 = vld [vmem:[#allocation8 + $0x48] sm:$0xff] }
 0x1cd   :  { %v1030_v8 = vpop.f32.mrb[0].mxu0 }
 0x1ce   :  { %v1544_v11 = vpop.f32.mrb[0].mxu1  ;;  %v1032_v12 = vpop.f32.mrb[1].mxu0  ;;  %v2273_v16 = vsub.f32 %v1030_v8, %v3380_v7 }
 0x1cf   :  { %v1546_v15 = vpop.f32.mrb[1].mxu1  ;;  %v2275_v18 = vsub.f32 %v1544_v11, %v3382_v9  ;;  %v2274_v19 = vsub.f32 %v1032_v12, %v3384_v10 }
 0x1d0   :  { %v2402_v21 = vmul.f32 %v3391_v14, %v2273_v16  ;;  %v2276_v24 = vsub.f32 %v1546_v15, %v3386_v13 }
 0x1d1   :  { %v1036_v20 = vpop.f32.mrb[2].mxu0  ;;  %v2404_v27 = vmul.f32 %v3391_v14, %v2275_v18  ;;  %v2403_v28 = vmul.f32 %v3391_v14, %v2274_v19 }
 0x1d2   :  { %v1550_v25 = vpop.f32.mrb[2].mxu1  ;;  %v1038_v26 = vpop.f32.mrb[3].mxu0  ;;  %v2530_v31 = vadd.f32 %v2402_v21, %v1995_v17  ;;  %v2405_v32 = vmul.f32 %v3391_v14, %v2276_v24  ;;  %v2277_v33 = vsub.f32 %v1036_v20, %v3380_v7  ;;  %v2007_v17 = vld [vmem:[#allocation8 + $0x60] sm:$0xff]  ;;  %v2008_v24 = vld [vmem:[#allocation8 + $0x68] sm:$0xff] }
 0x1d3   :  { %v1552_v30 = vpop.f32.mrb[3].mxu1  ;;  %v2532_v34 = vadd.f32 %v2404_v27, %v1997_v22  ;;  %v2531_v35 = vadd.f32 %v2403_v28, %v1996_v23  ;;  %v2279_v37 = vsub.f32 %v1550_v25, %v3382_v9  ;;  %v2278_v38 = vsub.f32 %v1038_v26, %v3384_v10  ;;  %v2009_v23 = vld [vmem:[#allocation8 + $0x70] sm:$0xff] }
 0x1d4   :  { %2658 = vst [vmem:[#allocation9] sm:$0xff] %v2530_v31  ;;  %v2533_v40 = vadd.f32 %v2405_v32, %v1998_v29  ;;  %v2406_v41 = vmul.f32 %v3391_v14, %v2277_v33  ;;  %v2280_v44 = vsub.f32 %v1552_v30, %v3386_v13  ;;  %v2010_v30 = vld [vmem:[#allocation8 + $0x78] sm:$0xff] }
 0x1d5   :  { %v1042_v39 = vpop.f32.mrb[4].mxu0  ;;  %2660 = vst [vmem:[#allocation9 + $0x10] sm:$0xff] %v2532_v34  ;;  %2659 = vst [vmem:[#allocation9 + $0x8] sm:$0xff] %v2531_v35  ;;  %v2408_v47 = vmul.f32 %v3391_v14, %v2279_v37  ;;  %v2407_v48 = vmul.f32 %v3391_v14, %v2278_v38  ;;  %v2011_v37 = vld [vmem:[#allocation8 + $0x80] sm:$0xff] }
 0x1d6   :  { %v1556_v45 = vpop.f32.mrb[4].mxu1  ;;  %v1044_v46 = vpop.f32.mrb[5].mxu0  ;;  %2661 = vst [vmem:[#allocation9 + $0x18] sm:$0xff] %v2533_v40  ;;  %v2534_v51 = vadd.f32 %v2406_v41, %v1999_v36  ;;  %v2409_v52 = vmul.f32 %v3391_v14, %v2280_v44  ;;  %v2281_v53 = vsub.f32 %v1042_v39, %v3380_v7  ;;  %v2012_v44 = vld [vmem:[#allocation8 + $0x88] sm:$0xff] }
 0x1d7   :  { %v1558_v50 = vpop.f32.mrb[5].mxu1  ;;  %v2536_v54 = vadd.f32 %v2408_v47, %v2001_v42  ;;  %v2535_v55 = vadd.f32 %v2407_v48, %v2000_v43  ;;  %v2283_v57 = vsub.f32 %v1556_v45, %v3382_v9  ;;  %v2282_v58 = vsub.f32 %v1044_v46, %v3384_v10  ;;  %v2013_v43 = vld [vmem:[#allocation8 + $0x90] sm:$0xff] }
 0x1d8   :  { %2662 = vst [vmem:[#allocation9 + $0x20] sm:$0xff] %v2534_v51  ;;  %v2537_v60 = vadd.f32 %v2409_v52, %v2002_v49  ;;  %v2410_v61 = vmul.f32 %v3391_v14, %v2281_v53  ;;  %v2284_v0 = vsub.f32 %v1558_v50, %v3386_v13  ;;  %v2014_v50 = vld [vmem:[#allocation8 + $0x98] sm:$0xff] }
 0x1d9   :  { %v1048_v59 = vpop.f32.mrb[6].mxu0  ;;  %2664 = vst [vmem:[#allocation9 + $0x30] sm:$0xff] %v2536_v54  ;;  %2663 = vst [vmem:[#allocation9 + $0x28] sm:$0xff] %v2535_v55  ;;  %v2412_v3 = vmul.f32 %v3391_v14, %v2283_v57  ;;  %v2411_v4 = vmul.f32 %v3391_v14, %v2282_v58  ;;  %v2015_v57 = vld [vmem:[#allocation8 + $0xa0] sm:$0xff] }
 0x1da   :  { %v1562_v1 = vpop.f32.mrb[6].mxu1  ;;  %v1050_v2 = vpop.f32.mrb[7].mxu0  ;;  %2665 = vst [vmem:[#allocation9 + $0x38] sm:$0xff] %v2537_v60  ;;  %v2538_v8 = vadd.f32 %v2410_v61, %v2003_v56  ;;  %v2413_v11 = vmul.f32 %v3391_v14, %v2284_v0  ;;  %v2285_v12 = vsub.f32 %v1048_v59, %v3380_v7  ;;  %v2016_v0 = vld [vmem:[#allocation8 + $0xa8] sm:$0xff] }
 0x1db   :  { %v1564_v6 = vpop.f32.mrb[7].mxu1  ;;  %v2540_v15 = vadd.f32 %v2412_v3, %v2005_v62  ;;  %v2539_v16 = vadd.f32 %v2411_v4, %v2004_v63  ;;  %v2287_v18 = vsub.f32 %v1562_v1, %v3382_v9  ;;  %v2286_v19 = vsub.f32 %v1050_v2, %v3384_v10  ;;  %v2017_v63 = vld [vmem:[#allocation8 + $0xb0] sm:$0xff] }
 0x1dc   :  { %2666 = vst [vmem:[#allocation9 + $0x40] sm:$0xff] %v2538_v8  ;;  %v2541_v21 = vadd.f32 %v2413_v11, %v2006_v5  ;;  %v2414_v22 = vmul.f32 %v3391_v14, %v2285_v12  ;;  %v2288_v25 = vsub.f32 %v1564_v6, %v3386_v13  ;;  %v2018_v6 = vld [vmem:[#allocation8 + $0xb8] sm:$0xff] }
 0x1dd   :  { %v1054_v20 = vpop.f32.mrb[8].mxu0  ;;  %2668 = vst [vmem:[#allocation9 + $0x50] sm:$0xff] %v2540_v15  ;;  %2667 = vst [vmem:[#allocation9 + $0x48] sm:$0xff] %v2539_v16  ;;  %v2416_v28 = vmul.f32 %v3391_v14, %v2287_v18  ;;  %v2415_v29 = vmul.f32 %v3391_v14, %v2286_v19  ;;  %v2019_v18 = vld [vmem:[#allocation8 + $0xc0] sm:$0xff] }
 0x1de   :  { %v1568_v26 = vpop.f32.mrb[8].mxu1  ;;  %v1056_v27 = vpop.f32.mrb[9].mxu0  ;;  %2669 = vst [vmem:[#allocation9 + $0x58] sm:$0xff] %v2541_v21  ;;  %v2542_v32 = vadd.f32 %v2414_v22, %v2007_v17  ;;  %v2417_v33 = vmul.f32 %v3391_v14, %v2288_v25  ;;  %v2289_v34 = vsub.f32 %v1054_v20, %v3380_v7  ;;  %v2020_v25 = vld [vmem:[#allocation8 + $0xc8] sm:$0xff] }
 0x1df   :  { %v1570_v31 = vpop.f32.mrb[9].mxu1  ;;  %v2544_v35 = vadd.f32 %v2416_v28, %v2009_v23  ;;  %v2543_v36 = vadd.f32 %v2415_v29, %v2008_v24  ;;  %v2291_v38 = vsub.f32 %v1568_v26, %v3382_v9  ;;  %v2290_v39 = vsub.f32 %v1056_v27, %v3384_v10  ;;  %v2021_v24 = vld [vmem:[#allocation8 + $0xd0] sm:$0xff] }
 0x1e0   :  { %2670 = vst [vmem:[#allocation9 + $0x60] sm:$0xff] %v2542_v32  ;;  %v2545_v41 = vadd.f32 %v2417_v33, %v2010_v30  ;;  %v2418_v42 = vmul.f32 %v3391_v14, %v2289_v34  ;;  %v2292_v45 = vsub.f32 %v1570_v31, %v3386_v13  ;;  %v2022_v31 = vld [vmem:[#allocation8 + $0xd8] sm:$0xff] }
 0x1e1   :  { %v1060_v40 = vpop.f32.mrb[10].mxu0  ;;  %2672 = vst [vmem:[#allocation9 + $0x70] sm:$0xff] %v2544_v35  ;;  %2671 = vst [vmem:[#allocation9 + $0x68] sm:$0xff] %v2543_v36  ;;  %v2420_v48 = vmul.f32 %v3391_v14, %v2291_v38  ;;  %v2419_v49 = vmul.f32 %v3391_v14, %v2290_v39  ;;  %v2023_v38 = vld [vmem:[#allocation8 + $0xe0] sm:$0xff] }
 0x1e2   :  { %v1574_v46 = vpop.f32.mrb[10].mxu1  ;;  %v1062_v47 = vpop.f32.mrb[11].mxu0  ;;  %2673 = vst [vmem:[#allocation9 + $0x78] sm:$0xff] %v2545_v41  ;;  %v2546_v52 = vadd.f32 %v2418_v42, %v2011_v37  ;;  %v2421_v53 = vmul.f32 %v3391_v14, %v2292_v45  ;;  %v2293_v54 = vsub.f32 %v1060_v40, %v3380_v7  ;;  %v2024_v45 = vld [vmem:[#allocation8 + $0xe8] sm:$0xff] }
 0x1e3   :  { %v1576_v51 = vpop.f32.mrb[11].mxu1  ;;  %v2548_v55 = vadd.f32 %v2420_v48, %v2013_v43  ;;  %v2547_v56 = vadd.f32 %v2419_v49, %v2012_v44  ;;  %v2295_v58 = vsub.f32 %v1574_v46, %v3382_v9  ;;  %v2294_v59 = vsub.f32 %v1062_v47, %v3384_v10  ;;  %v2025_v44 = vld [vmem:[#allocation8 + $0xf0] sm:$0xff] }
 0x1e4   :  { %2674 = vst [vmem:[#allocation9 + $0x80] sm:$0xff] %v2546_v52  ;;  %v2549_v61 = vadd.f32 %v2421_v53, %v2014_v50  ;;  %v2422_v62 = vmul.f32 %v3391_v14, %v2293_v54  ;;  %v2296_v1 = vsub.f32 %v1576_v51, %v3386_v13  ;;  %v2026_v51 = vld [vmem:[#allocation8 + $0xf8] sm:$0xff] }
 0x1e5   :  { %v1066_v60 = vpop.f32.mrb[12].mxu0  ;;  %2676 = vst [vmem:[#allocation9 + $0x90] sm:$0xff] %v2548_v55  ;;  %2675 = vst [vmem:[#allocation9 + $0x88] sm:$0xff] %v2547_v56  ;;  %v2424_v4 = vmul.f32 %v3391_v14, %v2295_v58  ;;  %v2423_v5 = vmul.f32 %v3391_v14, %v2294_v59  ;;  %v2027_v58 = vld [vmem:[#allocation8 + $0x100] sm:$0xff] }
 0x1e6   :  { %v1580_v2 = vpop.f32.mrb[12].mxu1  ;;  %v1068_v3 = vpop.f32.mrb[13].mxu0  ;;  %2677 = vst [vmem:[#allocation9 + $0x98] sm:$0xff] %v2549_v61  ;;  %v2550_v11 = vadd.f32 %v2422_v62, %v2015_v57  ;;  %v2425_v12 = vmul.f32 %v3391_v14, %v2296_v1  ;;  %v2297_v15 = vsub.f32 %v1066_v60, %v3380_v7  ;;  %v2028_v1 = vld [vmem:[#allocation8 + $0x108] sm:$0xff] }
 0x1e7   :  { %v1582_v8 = vpop.f32.mrb[13].mxu1  ;;  %v2552_v16 = vadd.f32 %v2424_v4, %v2017_v63  ;;  %v2551_v17 = vadd.f32 %v2423_v5, %v2016_v0  ;;  %v2299_v19 = vsub.f32 %v1580_v2, %v3382_v9  ;;  %v2298_v20 = vsub.f32 %v1068_v3, %v3384_v10  ;;  %v2029_v0 = vld [vmem:[#allocation8 + $0x110] sm:$0xff] }
 0x1e8   :  { %2678 = vst [vmem:[#allocation9 + $0xa0] sm:$0xff] %v2550_v11  ;;  %v2553_v22 = vadd.f32 %v2425_v12, %v2018_v6  ;;  %v2426_v23 = vmul.f32 %v3391_v14, %v2297_v15  ;;  %v2300_v26 = vsub.f32 %v1582_v8, %v3386_v13  ;;  %v2030_v8 = vld [vmem:[#allocation8 + $0x118] sm:$0xff] }
 0x1e9   :  { %v1072_v21 = vpop.f32.mrb[14].mxu0  ;;  %2680 = vst [vmem:[#allocation9 + $0xb0] sm:$0xff] %v2552_v16  ;;  %2679 = vst [vmem:[#allocation9 + $0xa8] sm:$0xff] %v2551_v17  ;;  %v2428_v29 = vmul.f32 %v3391_v14, %v2299_v19  ;;  %v2427_v30 = vmul.f32 %v3391_v14, %v2298_v20  ;;  %v2031_v19 = vld [vmem:[#allocation8 + $0x120] sm:$0xff] }
 0x1ea   :  { %v1586_v27 = vpop.f32.mrb[14].mxu1  ;;  %v1074_v28 = vpop.f32.mrb[15].mxu0  ;;  %2681 = vst [vmem:[#allocation9 + $0xb8] sm:$0xff] %v2553_v22  ;;  %v2554_v33 = vadd.f32 %v2426_v23, %v2019_v18  ;;  %v2429_v34 = vmul.f32 %v3391_v14, %v2300_v26  ;;  %v2301_v35 = vsub.f32 %v1072_v21, %v3380_v7  ;;  %v2032_v26 = vld [vmem:[#allocation8 + $0x128] sm:$0xff] }
 0x1eb   :  { %v1588_v32 = vpop.f32.mrb[15].mxu1  ;;  %v2556_v36 = vadd.f32 %v2428_v29, %v2021_v24  ;;  %v2555_v37 = vadd.f32 %v2427_v30, %v2020_v25  ;;  %v2303_v39 = vsub.f32 %v1586_v27, %v3382_v9  ;;  %v2302_v40 = vsub.f32 %v1074_v28, %v3384_v10  ;;  %v2033_v25 = vld [vmem:[#allocation8 + $0x130] sm:$0xff] }
 0x1ec   :  { %2682 = vst [vmem:[#allocation9 + $0xc0] sm:$0xff] %v2554_v33  ;;  %v2557_v42 = vadd.f32 %v2429_v34, %v2022_v31  ;;  %v2430_v43 = vmul.f32 %v3391_v14, %v2301_v35  ;;  %v2304_v46 = vsub.f32 %v1588_v32, %v3386_v13  ;;  %v2034_v32 = vld [vmem:[#allocation8 + $0x138] sm:$0xff] }
 0x1ed   :  { %v1078_v41 = vpop.f32.mrb[16].mxu0  ;;  %2684 = vst [vmem:[#allocation9 + $0xd0] sm:$0xff] %v2556_v36  ;;  %2683 = vst [vmem:[#allocation9 + $0xc8] sm:$0xff] %v2555_v37  ;;  %v2432_v49 = vmul.f32 %v3391_v14, %v2303_v39  ;;  %v2431_v50 = vmul.f32 %v3391_v14, %v2302_v40  ;;  %v2035_v39 = vld [vmem:[#allocation8 + $0x140] sm:$0xff] }
 0x1ee   :  { %v1592_v47 = vpop.f32.mrb[16].mxu1  ;;  %v1080_v48 = vpop.f32.mrb[17].mxu0  ;;  %2685 = vst [vmem:[#allocation9 + $0xd8] sm:$0xff] %v2557_v42  ;;  %v2558_v53 = vadd.f32 %v2430_v43, %v2023_v38  ;;  %v2433_v54 = vmul.f32 %v3391_v14, %v2304_v46  ;;  %v2305_v55 = vsub.f32 %v1078_v41, %v3380_v7  ;;  %v2036_v46 = vld [vmem:[#allocation8 + $0x148] sm:$0xff] }
 0x1ef   :  { %v1594_v52 = vpop.f32.mrb[17].mxu1  ;;  %v2560_v56 = vadd.f32 %v2432_v49, %v2025_v44  ;;  %v2559_v57 = vadd.f32 %v2431_v50, %v2024_v45  ;;  %v2307_v59 = vsub.f32 %v1592_v47, %v3382_v9  ;;  %v2306_v60 = vsub.f32 %v1080_v48, %v3384_v10  ;;  %v2037_v45 = vld [vmem:[#allocation8 + $0x150] sm:$0xff] }
 0x1f0   :  { %2686 = vst [vmem:[#allocation9 + $0xe0] sm:$0xff] %v2558_v53  ;;  %v2561_v62 = vadd.f32 %v2433_v54, %v2026_v51  ;;  %v2434_v63 = vmul.f32 %v3391_v14, %v2305_v55  ;;  %v2308_v2 = vsub.f32 %v1594_v52, %v3386_v13  ;;  %v2038_v52 = vld [vmem:[#allocation8 + $0x158] sm:$0xff] }
 0x1f1   :  { %v1084_v61 = vpop.f32.mrb[18].mxu0  ;;  %2688 = vst [vmem:[#allocation9 + $0xf0] sm:$0xff] %v2560_v56  ;;  %2687 = vst [vmem:[#allocation9 + $0xe8] sm:$0xff] %v2559_v57  ;;  %v2436_v5 = vmul.f32 %v3391_v14, %v2307_v59  ;;  %v2435_v6 = vmul.f32 %v3391_v14, %v2306_v60  ;;  %v2039_v59 = vld [vmem:[#allocation8 + $0x160] sm:$0xff] }
 0x1f2   :  { %v1598_v3 = vpop.f32.mrb[18].mxu1  ;;  %v1086_v4 = vpop.f32.mrb[19].mxu0  ;;  %2689 = vst [vmem:[#allocation9 + $0xf8] sm:$0xff] %v2561_v62  ;;  %v2562_v12 = vadd.f32 %v2434_v63, %v2027_v58  ;;  %v2437_v15 = vmul.f32 %v3391_v14, %v2308_v2  ;;  %v2309_v16 = vsub.f32 %v1084_v61, %v3380_v7  ;;  %v2040_v2 = vld [vmem:[#allocation8 + $0x168] sm:$0xff] }
 0x1f3   :  { %v1600_v11 = vpop.f32.mrb[19].mxu1  ;;  %v2564_v17 = vadd.f32 %v2436_v5, %v2029_v0  ;;  %v2563_v18 = vadd.f32 %v2435_v6, %v2028_v1  ;;  %v2311_v20 = vsub.f32 %v1598_v3, %v3382_v9  ;;  %v2310_v21 = vsub.f32 %v1086_v4, %v3384_v10  ;;  %v2041_v1 = vld [vmem:[#allocation8 + $0x170] sm:$0xff] }
 0x1f4   :  { %2690 = vst [vmem:[#allocation9 + $0x100] sm:$0xff] %v2562_v12  ;;  %v2565_v23 = vadd.f32 %v2437_v15, %v2030_v8  ;;  %v2438_v24 = vmul.f32 %v3391_v14, %v2309_v16  ;;  %v2312_v27 = vsub.f32 %v1600_v11, %v3386_v13  ;;  %v2042_v11 = vld [vmem:[#allocation8 + $0x178] sm:$0xff] }
 0x1f5   :  { %v1090_v22 = vpop.f32.mrb[20].mxu0  ;;  %2692 = vst [vmem:[#allocation9 + $0x110] sm:$0xff] %v2564_v17  ;;  %2691 = vst [vmem:[#allocation9 + $0x108] sm:$0xff] %v2563_v18  ;;  %v2440_v30 = vmul.f32 %v3391_v14, %v2311_v20  ;;  %v2439_v31 = vmul.f32 %v3391_v14, %v2310_v21  ;;  %v2043_v20 = vld [vmem:[#allocation8 + $0x180] sm:$0xff] }
 0x1f6   :  { %v1604_v28 = vpop.f32.mrb[20].mxu1  ;;  %v1092_v29 = vpop.f32.mrb[21].mxu0  ;;  %2693 = vst [vmem:[#allocation9 + $0x118] sm:$0xff] %v2565_v23  ;;  %v2566_v34 = vadd.f32 %v2438_v24, %v2031_v19  ;;  %v2441_v35 = vmul.f32 %v3391_v14, %v2312_v27  ;;  %v2313_v36 = vsub.f32 %v1090_v22, %v3380_v7  ;;  %v2044_v27 = vld [vmem:[#allocation8 + $0x188] sm:$0xff] }
 0x1f7   :  { %v1606_v33 = vpop.f32.mrb[21].mxu1  ;;  %v2568_v37 = vadd.f32 %v2440_v30, %v2033_v25  ;;  %v2567_v38 = vadd.f32 %v2439_v31, %v2032_v26  ;;  %v2315_v40 = vsub.f32 %v1604_v28, %v3382_v9  ;;  %v2314_v41 = vsub.f32 %v1092_v29, %v3384_v10  ;;  %v2045_v26 = vld [vmem:[#allocation8 + $0x190] sm:$0xff] }
 0x1f8   :  { %2694 = vst [vmem:[#allocation9 + $0x120] sm:$0xff] %v2566_v34  ;;  %v2569_v43 = vadd.f32 %v2441_v35, %v2034_v32  ;;  %v2442_v44 = vmul.f32 %v3391_v14, %v2313_v36  ;;  %v2316_v47 = vsub.f32 %v1606_v33, %v3386_v13  ;;  %v2046_v33 = vld [vmem:[#allocation8 + $0x198] sm:$0xff] }
 0x1f9   :  { %v1096_v42 = vpop.f32.mrb[22].mxu0  ;;  %2696 = vst [vmem:[#allocation9 + $0x130] sm:$0xff] %v2568_v37  ;;  %2695 = vst [vmem:[#allocation9 + $0x128] sm:$0xff] %v2567_v38  ;;  %v2444_v50 = vmul.f32 %v3391_v14, %v2315_v40  ;;  %v2443_v51 = vmul.f32 %v3391_v14, %v2314_v41  ;;  %v2047_v40 = vld [vmem:[#allocation8 + $0x1a0] sm:$0xff] }
 0x1fa   :  { %v1610_v48 = vpop.f32.mrb[22].mxu1  ;;  %v1098_v49 = vpop.f32.mrb[23].mxu0  ;;  %2697 = vst [vmem:[#allocation9 + $0x138] sm:$0xff] %v2569_v43  ;;  %v2570_v54 = vadd.f32 %v2442_v44, %v2035_v39  ;;  %v2445_v55 = vmul.f32 %v3391_v14, %v2316_v47  ;;  %v2317_v56 = vsub.f32 %v1096_v42, %v3380_v7  ;;  %v2048_v47 = vld [vmem:[#allocation8 + $0x1a8] sm:$0xff] }
 0x1fb   :  { %v1612_v53 = vpop.f32.mrb[23].mxu1  ;;  %v2572_v57 = vadd.f32 %v2444_v50, %v2037_v45  ;;  %v2571_v58 = vadd.f32 %v2443_v51, %v2036_v46  ;;  %v2319_v60 = vsub.f32 %v1610_v48, %v3382_v9  ;;  %v2318_v61 = vsub.f32 %v1098_v49, %v3384_v10  ;;  %v2049_v46 = vld [vmem:[#allocation8 + $0x1b0] sm:$0xff] }
 0x1fc   :  { %2698 = vst [vmem:[#allocation9 + $0x140] sm:$0xff] %v2570_v54  ;;  %v2573_v63 = vadd.f32 %v2445_v55, %v2038_v52  ;;  %v2446_v0 = vmul.f32 %v3391_v14, %v2317_v56  ;;  %v2320_v3 = vsub.f32 %v1612_v53, %v3386_v13  ;;  %v2050_v53 = vld [vmem:[#allocation8 + $0x1b8] sm:$0xff] }
 0x1fd   :  { %v1102_v62 = vpop.f32.mrb[24].mxu0  ;;  %2700 = vst [vmem:[#allocation9 + $0x150] sm:$0xff] %v2572_v57  ;;  %2699 = vst [vmem:[#allocation9 + $0x148] sm:$0xff] %v2571_v58  ;;  %v2448_v6 = vmul.f32 %v3391_v14, %v2319_v60  ;;  %v2447_v8 = vmul.f32 %v3391_v14, %v2318_v61  ;;  %v2051_v60 = vld [vmem:[#allocation8 + $0x1c0] sm:$0xff] }
 0x1fe   :  { %v1616_v4 = vpop.f32.mrb[24].mxu1  ;;  %v1104_v5 = vpop.f32.mrb[25].mxu0  ;;  %2701 = vst [vmem:[#allocation9 + $0x158] sm:$0xff] %v2573_v63  ;;  %v2574_v15 = vadd.f32 %v2446_v0, %v2039_v59  ;;  %v2449_v16 = vmul.f32 %v3391_v14, %v2320_v3  ;;  %v2321_v17 = vsub.f32 %v1102_v62, %v3380_v7  ;;  %v2052_v3 = vld [vmem:[#allocation8 + $0x1c8] sm:$0xff] }
 0x1ff   :  { %v1618_v12 = vpop.f32.mrb[25].mxu1  ;;  %v2576_v18 = vadd.f32 %v2448_v6, %v2041_v1  ;;  %v2575_v19 = vadd.f32 %v2447_v8, %v2040_v2  ;;  %v2323_v21 = vsub.f32 %v1616_v4, %v3382_v9  ;;  %v2322_v22 = vsub.f32 %v1104_v5, %v3384_v10  ;;  %v2053_v2 = vld [vmem:[#allocation8 + $0x1d0] sm:$0xff] }
 0x200   :  { %2702 = vst [vmem:[#allocation9 + $0x160] sm:$0xff] %v2574_v15  ;;  %v2577_v24 = vadd.f32 %v2449_v16, %v2042_v11  ;;  %v2450_v25 = vmul.f32 %v3391_v14, %v2321_v17  ;;  %v2324_v28 = vsub.f32 %v1618_v12, %v3386_v13  ;;  %v2054_v12 = vld [vmem:[#allocation8 + $0x1d8] sm:$0xff] }
 0x201   :  { %v1108_v23 = vpop.f32.mrb[26].mxu0  ;;  %2704 = vst [vmem:[#allocation9 + $0x170] sm:$0xff] %v2576_v18  ;;  %2703 = vst [vmem:[#allocation9 + $0x168] sm:$0xff] %v2575_v19  ;;  %v2452_v31 = vmul.f32 %v3391_v14, %v2323_v21  ;;  %v2451_v32 = vmul.f32 %v3391_v14, %v2322_v22  ;;  %v2055_v21 = vld [vmem:[#allocation8 + $0x1e0] sm:$0xff] }
 0x202   :  { %v1622_v29 = vpop.f32.mrb[26].mxu1  ;;  %v1110_v30 = vpop.f32.mrb[27].mxu0  ;;  %2705 = vst [vmem:[#allocation9 + $0x178] sm:$0xff] %v2577_v24  ;;  %v2578_v35 = vadd.f32 %v2450_v25, %v2043_v20  ;;  %v2453_v36 = vmul.f32 %v3391_v14, %v2324_v28  ;;  %v2325_v37 = vsub.f32 %v1108_v23, %v3380_v7  ;;  %v2056_v28 = vld [vmem:[#allocation8 + $0x1e8] sm:$0xff] }
 0x203   :  { %v1624_v34 = vpop.f32.mrb[27].mxu1  ;;  %v2580_v38 = vadd.f32 %v2452_v31, %v2045_v26  ;;  %v2579_v39 = vadd.f32 %v2451_v32, %v2044_v27  ;;  %v2327_v41 = vsub.f32 %v1622_v29, %v3382_v9  ;;  %v2326_v42 = vsub.f32 %v1110_v30, %v3384_v10  ;;  %v2057_v27 = vld [vmem:[#allocation8 + $0x1f0] sm:$0xff] }
 0x204   :  { %2706 = vst [vmem:[#allocation9 + $0x180] sm:$0xff] %v2578_v35  ;;  %v2581_v44 = vadd.f32 %v2453_v36, %v2046_v33  ;;  %v2454_v45 = vmul.f32 %v3391_v14, %v2325_v37  ;;  %v2328_v48 = vsub.f32 %v1624_v34, %v3386_v13  ;;  %v2058_v34 = vld [vmem:[#allocation8 + $0x1f8] sm:$0xff] }
 0x205   :  { %v1114_v43 = vpop.f32.mrb[28].mxu0  ;;  %2708 = vst [vmem:[#allocation9 + $0x190] sm:$0xff] %v2580_v38  ;;  %2707 = vst [vmem:[#allocation9 + $0x188] sm:$0xff] %v2579_v39  ;;  %v2456_v51 = vmul.f32 %v3391_v14, %v2327_v41  ;;  %v2455_v52 = vmul.f32 %v3391_v14, %v2326_v42  ;;  %v2059_v41 = vld [vmem:[#allocation8 + $0x200] sm:$0xff] }
 0x206   :  { %v1628_v49 = vpop.f32.mrb[28].mxu1  ;;  %v1116_v50 = vpop.f32.mrb[29].mxu0  ;;  %2709 = vst [vmem:[#allocation9 + $0x198] sm:$0xff] %v2581_v44  ;;  %v2582_v55 = vadd.f32 %v2454_v45, %v2047_v40  ;;  %v2457_v56 = vmul.f32 %v3391_v14, %v2328_v48  ;;  %v2329_v57 = vsub.f32 %v1114_v43, %v3380_v7  ;;  %v2060_v48 = vld [vmem:[#allocation8 + $0x208] sm:$0xff] }
 0x207   :  { %v1630_v54 = vpop.f32.mrb[29].mxu1  ;;  %v2584_v58 = vadd.f32 %v2456_v51, %v2049_v46  ;;  %v2583_v59 = vadd.f32 %v2455_v52, %v2048_v47  ;;  %v2331_v61 = vsub.f32 %v1628_v49, %v3382_v9  ;;  %v2330_v62 = vsub.f32 %v1116_v50, %v3384_v10  ;;  %v2061_v47 = vld [vmem:[#allocation8 + $0x210] sm:$0xff] }
 0x208   :  { %2710 = vst [vmem:[#allocation9 + $0x1a0] sm:$0xff] %v2582_v55  ;;  %v2585_v0 = vadd.f32 %v2457_v56, %v2050_v53  ;;  %v2458_v1 = vmul.f32 %v3391_v14, %v2329_v57  ;;  %v2332_v4 = vsub.f32 %v1630_v54, %v3386_v13  ;;  %v2062_v54 = vld [vmem:[#allocation8 + $0x218] sm:$0xff] }
 0x209   :  { %v1120_v63 = vpop.f32.mrb[30].mxu0  ;;  %2712 = vst [vmem:[#allocation9 + $0x1b0] sm:$0xff] %v2584_v58  ;;  %2711 = vst [vmem:[#allocation9 + $0x1a8] sm:$0xff] %v2583_v59  ;;  %v2460_v8 = vmul.f32 %v3391_v14, %v2331_v61  ;;  %v2459_v11 = vmul.f32 %v3391_v14, %v2330_v62  ;;  %v2063_v61 = vld [vmem:[#allocation8 + $0x220] sm:$0xff] }
 0x20a   :  { %v1634_v5 = vpop.f32.mrb[30].mxu1  ;;  %v1122_v6 = vpop.f32.mrb[31].mxu0  ;;  %2713 = vst [vmem:[#allocation9 + $0x1b8] sm:$0xff] %v2585_v0  ;;  %v2586_v16 = vadd.f32 %v2458_v1, %v2051_v60  ;;  %v2461_v17 = vmul.f32 %v3391_v14, %v2332_v4  ;;  %v2333_v18 = vsub.f32 %v1120_v63, %v3380_v7  ;;  %v2064_v4 = vld [vmem:[#allocation8 + $0x228] sm:$0xff] }
 0x20b   :  { %v1636_v15 = vpop.f32.mrb[31].mxu1  ;;  %v2588_v19 = vadd.f32 %v2460_v8, %v2053_v2  ;;  %v2587_v20 = vadd.f32 %v2459_v11, %v2052_v3  ;;  %v2335_v22 = vsub.f32 %v1634_v5, %v3382_v9  ;;  %v2334_v23 = vsub.f32 %v1122_v6, %v3384_v10  ;;  %v2065_v3 = vld [vmem:[#allocation8 + $0x230] sm:$0xff] }
 0x20c   :  { %2714 = vst [vmem:[#allocation9 + $0x1c0] sm:$0xff] %v2586_v16  ;;  %v2589_v25 = vadd.f32 %v2461_v17, %v2054_v12  ;;  %v2462_v26 = vmul.f32 %v3391_v14, %v2333_v18  ;;  %v2336_v29 = vsub.f32 %v1636_v15, %v3386_v13  ;;  %v2066_v15 = vld [vmem:[#allocation8 + $0x238] sm:$0xff] }
 0x20d   :  { %v1126_v24 = vpop.f32.mrb[32].mxu0  ;;  %2716 = vst [vmem:[#allocation9 + $0x1d0] sm:$0xff] %v2588_v19  ;;  %2715 = vst [vmem:[#allocation9 + $0x1c8] sm:$0xff] %v2587_v20  ;;  %v2464_v32 = vmul.f32 %v3391_v14, %v2335_v22  ;;  %v2463_v33 = vmul.f32 %v3391_v14, %v2334_v23  ;;  %v2067_v22 = vld [vmem:[#allocation8 + $0x240] sm:$0xff] }
 0x20e   :  { %v1640_v30 = vpop.f32.mrb[32].mxu1  ;;  %v1128_v31 = vpop.f32.mrb[33].mxu0  ;;  %2717 = vst [vmem:[#allocation9 + $0x1d8] sm:$0xff] %v2589_v25  ;;  %v2590_v36 = vadd.f32 %v2462_v26, %v2055_v21  ;;  %v2465_v37 = vmul.f32 %v3391_v14, %v2336_v29  ;;  %v2337_v38 = vsub.f32 %v1126_v24, %v3380_v7  ;;  %v2068_v29 = vld [vmem:[#allocation8 + $0x248] sm:$0xff] }
 0x20f   :  { %v1642_v35 = vpop.f32.mrb[33].mxu1  ;;  %v2592_v39 = vadd.f32 %v2464_v32, %v2057_v27  ;;  %v2591_v40 = vadd.f32 %v2463_v33, %v2056_v28  ;;  %v2339_v42 = vsub.f32 %v1640_v30, %v3382_v9  ;;  %v2338_v43 = vsub.f32 %v1128_v31, %v3384_v10  ;;  %v2069_v28 = vld [vmem:[#allocation8 + $0x250] sm:$0xff] }
 0x210   :  { %2718 = vst [vmem:[#allocation9 + $0x1e0] sm:$0xff] %v2590_v36  ;;  %v2593_v45 = vadd.f32 %v2465_v37, %v2058_v34  ;;  %v2466_v46 = vmul.f32 %v3391_v14, %v2337_v38  ;;  %v2340_v49 = vsub.f32 %v1642_v35, %v3386_v13  ;;  %v2070_v35 = vld [vmem:[#allocation8 + $0x258] sm:$0xff] }
 0x211   :  { %v1132_v44 = vpop.f32.mrb[34].mxu0  ;;  %2720 = vst [vmem:[#allocation9 + $0x1f0] sm:$0xff] %v2592_v39  ;;  %2719 = vst [vmem:[#allocation9 + $0x1e8] sm:$0xff] %v2591_v40  ;;  %v2468_v52 = vmul.f32 %v3391_v14, %v2339_v42  ;;  %v2467_v53 = vmul.f32 %v3391_v14, %v2338_v43  ;;  %v2071_v42 = vld [vmem:[#allocation8 + $0x260] sm:$0xff] }
 0x212   :  { %v1646_v50 = vpop.f32.mrb[34].mxu1  ;;  %v1134_v51 = vpop.f32.mrb[35].mxu0  ;;  %2721 = vst [vmem:[#allocation9 + $0x1f8] sm:$0xff] %v2593_v45  ;;  %v2594_v56 = vadd.f32 %v2466_v46, %v2059_v41  ;;  %v2469_v57 = vmul.f32 %v3391_v14, %v2340_v49  ;;  %v2341_v58 = vsub.f32 %v1132_v44, %v3380_v7  ;;  %v2072_v49 = vld [vmem:[#allocation8 + $0x268] sm:$0xff] }
 0x213   :  { %v1648_v55 = vpop.f32.mrb[35].mxu1  ;;  %v2596_v59 = vadd.f32 %v2468_v52, %v2061_v47  ;;  %v2595_v60 = vadd.f32 %v2467_v53, %v2060_v48  ;;  %v2343_v62 = vsub.f32 %v1646_v50, %v3382_v9  ;;  %v2342_v63 = vsub.f32 %v1134_v51, %v3384_v10  ;;  %v2073_v48 = vld [vmem:[#allocation8 + $0x270] sm:$0xff] }
 0x214   :  { %2722 = vst [vmem:[#allocation9 + $0x200] sm:$0xff] %v2594_v56  ;;  %v2597_v1 = vadd.f32 %v2469_v57, %v2062_v54  ;;  %v2470_v2 = vmul.f32 %v3391_v14, %v2341_v58  ;;  %v2344_v5 = vsub.f32 %v1648_v55, %v3386_v13  ;;  %v2074_v55 = vld [vmem:[#allocation8 + $0x278] sm:$0xff] }
 0x215   :  { %v1138_v0 = vpop.f32.mrb[36].mxu0  ;;  %2724 = vst [vmem:[#allocation9 + $0x210] sm:$0xff] %v2596_v59  ;;  %2723 = vst [vmem:[#allocation9 + $0x208] sm:$0xff] %v2595_v60  ;;  %v2472_v11 = vmul.f32 %v3391_v14, %v2343_v62  ;;  %v2471_v12 = vmul.f32 %v3391_v14, %v2342_v63  ;;  %v2075_v62 = vld [vmem:[#allocation8 + $0x280] sm:$0xff] }
 0x216   :  { %v1652_v6 = vpop.f32.mrb[36].mxu1  ;;  %v1140_v8 = vpop.f32.mrb[37].mxu0  ;;  %2725 = vst [vmem:[#allocation9 + $0x218] sm:$0xff] %v2597_v1  ;;  %v2598_v17 = vadd.f32 %v2470_v2, %v2063_v61  ;;  %v2473_v18 = vmul.f32 %v3391_v14, %v2344_v5  ;;  %v2345_v19 = vsub.f32 %v1138_v0, %v3380_v7  ;;  %v2076_v5 = vld [vmem:[#allocation8 + $0x288] sm:$0xff] }
 0x217   :  { %v1654_v16 = vpop.f32.mrb[37].mxu1  ;;  %v2600_v20 = vadd.f32 %v2472_v11, %v2065_v3  ;;  %v2599_v21 = vadd.f32 %v2471_v12, %v2064_v4  ;;  %v2347_v23 = vsub.f32 %v1652_v6, %v3382_v9  ;;  %v2346_v24 = vsub.f32 %v1140_v8, %v3384_v10  ;;  %v2077_v4 = vld [vmem:[#allocation8 + $0x290] sm:$0xff] }
 0x218   :  { %2726 = vst [vmem:[#allocation9 + $0x220] sm:$0xff] %v2598_v17  ;;  %v2601_v26 = vadd.f32 %v2473_v18, %v2066_v15  ;;  %v2474_v27 = vmul.f32 %v3391_v14, %v2345_v19  ;;  %v2348_v30 = vsub.f32 %v1654_v16, %v3386_v13  ;;  %v2078_v16 = vld [vmem:[#allocation8 + $0x298] sm:$0xff] }
 0x219   :  { %v1144_v25 = vpop.f32.mrb[38].mxu0  ;;  %2728 = vst [vmem:[#allocation9 + $0x230] sm:$0xff] %v2600_v20  ;;  %2727 = vst [vmem:[#allocation9 + $0x228] sm:$0xff] %v2599_v21  ;;  %v2476_v33 = vmul.f32 %v3391_v14, %v2347_v23  ;;  %v2475_v34 = vmul.f32 %v3391_v14, %v2346_v24  ;;  %v2079_v23 = vld [vmem:[#allocation8 + $0x2a0] sm:$0xff] }
 0x21a   :  { %v1658_v31 = vpop.f32.mrb[38].mxu1  ;;  %v1146_v32 = vpop.f32.mrb[39].mxu0  ;;  %2729 = vst [vmem:[#allocation9 + $0x238] sm:$0xff] %v2601_v26  ;;  %v2602_v37 = vadd.f32 %v2474_v27, %v2067_v22  ;;  %v2477_v38 = vmul.f32 %v3391_v14, %v2348_v30  ;;  %v2349_v39 = vsub.f32 %v1144_v25, %v3380_v7  ;;  %v2080_v30 = vld [vmem:[#allocation8 + $0x2a8] sm:$0xff] }
 0x21b   :  { %v1660_v36 = vpop.f32.mrb[39].mxu1  ;;  %v2604_v40 = vadd.f32 %v2476_v33, %v2069_v28  ;;  %v2603_v41 = vadd.f32 %v2475_v34, %v2068_v29  ;;  %v2351_v43 = vsub.f32 %v1658_v31, %v3382_v9  ;;  %v2350_v44 = vsub.f32 %v1146_v32, %v3384_v10  ;;  %v2081_v29 = vld [vmem:[#allocation8 + $0x2b0] sm:$0xff] }
 0x21c   :  { %2730 = vst [vmem:[#allocation9 + $0x240] sm:$0xff] %v2602_v37  ;;  %v2605_v46 = vadd.f32 %v2477_v38, %v2070_v35  ;;  %v2478_v47 = vmul.f32 %v3391_v14, %v2349_v39  ;;  %v2352_v50 = vsub.f32 %v1660_v36, %v3386_v13  ;;  %v2082_v36 = vld [vmem:[#allocation8 + $0x2b8] sm:$0xff] }
 0x21d   :  { %v1150_v45 = vpop.f32.mrb[40].mxu0  ;;  %2732 = vst [vmem:[#allocation9 + $0x250] sm:$0xff] %v2604_v40  ;;  %2731 = vst [vmem:[#allocation9 + $0x248] sm:$0xff] %v2603_v41  ;;  %v2480_v53 = vmul.f32 %v3391_v14, %v2351_v43  ;;  %v2479_v54 = vmul.f32 %v3391_v14, %v2350_v44  ;;  %v2083_v43 = vld [vmem:[#allocation8 + $0x2c0] sm:$0xff] }
 0x21e   :  { %v1664_v51 = vpop.f32.mrb[40].mxu1  ;;  %v1152_v52 = vpop.f32.mrb[41].mxu0  ;;  %2733 = vst [vmem:[#allocation9 + $0x258] sm:$0xff] %v2605_v46  ;;  %v2606_v57 = vadd.f32 %v2478_v47, %v2071_v42  ;;  %v2481_v58 = vmul.f32 %v3391_v14, %v2352_v50  ;;  %v2353_v59 = vsub.f32 %v1150_v45, %v3380_v7  ;;  %v2084_v50 = vld [vmem:[#allocation8 + $0x2c8] sm:$0xff] }
 0x21f   :  { %v1666_v56 = vpop.f32.mrb[41].mxu1  ;;  %v2608_v60 = vadd.f32 %v2480_v53, %v2073_v48  ;;  %v2607_v61 = vadd.f32 %v2479_v54, %v2072_v49  ;;  %v2355_v63 = vsub.f32 %v1664_v51, %v3382_v9  ;;  %v2354_v0 = vsub.f32 %v1152_v52, %v3384_v10  ;;  %v2085_v49 = vld [vmem:[#allocation8 + $0x2d0] sm:$0xff] }
 0x220   :  { %2734 = vst [vmem:[#allocation9 + $0x260] sm:$0xff] %v2606_v57  ;;  %v2609_v2 = vadd.f32 %v2481_v58, %v2074_v55  ;;  %v2482_v3 = vmul.f32 %v3391_v14, %v2353_v59  ;;  %v2356_v6 = vsub.f32 %v1666_v56, %v3386_v13  ;;  %v2086_v56 = vld [vmem:[#allocation8 + $0x2d8] sm:$0xff] }
 0x221   :  { %v1156_v1 = vpop.f32.mrb[42].mxu0  ;;  %2736 = vst [vmem:[#allocation9 + $0x270] sm:$0xff] %v2608_v60  ;;  %2735 = vst [vmem:[#allocation9 + $0x268] sm:$0xff] %v2607_v61  ;;  %v2484_v12 = vmul.f32 %v3391_v14, %v2355_v63  ;;  %v2483_v15 = vmul.f32 %v3391_v14, %v2354_v0  ;;  %v2087_v63 = vld [vmem:[#allocation8 + $0x2e0] sm:$0xff] }
 0x222   :  { %v1670_v8 = vpop.f32.mrb[42].mxu1  ;;  %v1158_v11 = vpop.f32.mrb[43].mxu0  ;;  %2737 = vst [vmem:[#allocation9 + $0x278] sm:$0xff] %v2609_v2  ;;  %v2610_v18 = vadd.f32 %v2482_v3, %v2075_v62  ;;  %v2485_v19 = vmul.f32 %v3391_v14, %v2356_v6  ;;  %v2357_v20 = vsub.f32 %v1156_v1, %v3380_v7  ;;  %v2088_v6 = vld [vmem:[#allocation8 + $0x2e8] sm:$0xff] }
 0x223   :  { %v1672_v17 = vpop.f32.mrb[43].mxu1  ;;  %v2612_v21 = vadd.f32 %v2484_v12, %v2077_v4  ;;  %v2611_v22 = vadd.f32 %v2483_v15, %v2076_v5  ;;  %v2359_v24 = vsub.f32 %v1670_v8, %v3382_v9  ;;  %v2358_v25 = vsub.f32 %v1158_v11, %v3384_v10  ;;  %v2089_v5 = vld [vmem:[#allocation8 + $0x2f0] sm:$0xff] }
 0x224   :  { %2738 = vst [vmem:[#allocation9 + $0x280] sm:$0xff] %v2610_v18  ;;  %v2613_v27 = vadd.f32 %v2485_v19, %v2078_v16  ;;  %v2486_v28 = vmul.f32 %v3391_v14, %v2357_v20  ;;  %v2360_v31 = vsub.f32 %v1672_v17, %v3386_v13  ;;  %v2090_v17 = vld [vmem:[#allocation8 + $0x2f8] sm:$0xff] }
 0x225   :  { %v1162_v26 = vpop.f32.mrb[44].mxu0  ;;  %2740 = vst [vmem:[#allocation9 + $0x290] sm:$0xff] %v2612_v21  ;;  %2739 = vst [vmem:[#allocation9 + $0x288] sm:$0xff] %v2611_v22  ;;  %v2488_v34 = vmul.f32 %v3391_v14, %v2359_v24  ;;  %v2487_v35 = vmul.f32 %v3391_v14, %v2358_v25  ;;  %v2091_v24 = vld [vmem:[#allocation8 + $0x300] sm:$0xff] }
 0x226   :  { %v1676_v32 = vpop.f32.mrb[44].mxu1  ;;  %v1164_v33 = vpop.f32.mrb[45].mxu0  ;;  %2741 = vst [vmem:[#allocation9 + $0x298] sm:$0xff] %v2613_v27  ;;  %v2614_v38 = vadd.f32 %v2486_v28, %v2079_v23  ;;  %v2489_v39 = vmul.f32 %v3391_v14, %v2360_v31  ;;  %v2361_v40 = vsub.f32 %v1162_v26, %v3380_v7  ;;  %v2092_v31 = vld [vmem:[#allocation8 + $0x308] sm:$0xff] }
 0x227   :  { %v1678_v37 = vpop.f32.mrb[45].mxu1  ;;  %v2616_v41 = vadd.f32 %v2488_v34, %v2081_v29  ;;  %v2615_v42 = vadd.f32 %v2487_v35, %v2080_v30  ;;  %v2363_v44 = vsub.f32 %v1676_v32, %v3382_v9  ;;  %v2362_v45 = vsub.f32 %v1164_v33, %v3384_v10  ;;  %v2093_v30 = vld [vmem:[#allocation8 + $0x310] sm:$0xff] }
 0x228   :  { %2742 = vst [vmem:[#allocation9 + $0x2a0] sm:$0xff] %v2614_v38  ;;  %v2617_v47 = vadd.f32 %v2489_v39, %v2082_v36  ;;  %v2490_v48 = vmul.f32 %v3391_v14, %v2361_v40  ;;  %v2364_v51 = vsub.f32 %v1678_v37, %v3386_v13  ;;  %v2094_v37 = vld [vmem:[#allocation8 + $0x318] sm:$0xff] }
 0x229   :  { %v1168_v46 = vpop.f32.mrb[46].mxu0  ;;  %2744 = vst [vmem:[#allocation9 + $0x2b0] sm:$0xff] %v2616_v41  ;;  %2743 = vst [vmem:[#allocation9 + $0x2a8] sm:$0xff] %v2615_v42  ;;  %v2492_v54 = vmul.f32 %v3391_v14, %v2363_v44  ;;  %v2491_v55 = vmul.f32 %v3391_v14, %v2362_v45  ;;  %v2095_v44 = vld [vmem:[#allocation8 + $0x320] sm:$0xff] }
 0x22a   :  { %v1682_v52 = vpop.f32.mrb[46].mxu1  ;;  %v1170_v53 = vpop.f32.mrb[47].mxu0  ;;  %2745 = vst [vmem:[#allocation9 + $0x2b8] sm:$0xff] %v2617_v47  ;;  %v2618_v58 = vadd.f32 %v2490_v48, %v2083_v43  ;;  %v2493_v59 = vmul.f32 %v3391_v14, %v2364_v51  ;;  %v2365_v60 = vsub.f32 %v1168_v46, %v3380_v7  ;;  %v2096_v51 = vld [vmem:[#allocation8 + $0x328] sm:$0xff] }
 0x22b   :  { %v1684_v57 = vpop.f32.mrb[47].mxu1  ;;  %v2620_v61 = vadd.f32 %v2492_v54, %v2085_v49  ;;  %v2619_v62 = vadd.f32 %v2491_v55, %v2084_v50  ;;  %v2367_v0 = vsub.f32 %v1682_v52, %v3382_v9  ;;  %v2366_v1 = vsub.f32 %v1170_v53, %v3384_v10  ;;  %v2097_v50 = vld [vmem:[#allocation8 + $0x330] sm:$0xff] }
 0x22c   :  { %2746 = vst [vmem:[#allocation9 + $0x2c0] sm:$0xff] %v2618_v58  ;;  %v2621_v3 = vadd.f32 %v2493_v59, %v2086_v56  ;;  %v2494_v4 = vmul.f32 %v3391_v14, %v2365_v60  ;;  %v2368_v8 = vsub.f32 %v1684_v57, %v3386_v13  ;;  %v2098_v57 = vld [vmem:[#allocation8 + $0x338] sm:$0xff] }
 0x22d   :  { %v1174_v2 = vpop.f32.mrb[48].mxu0  ;;  %2748 = vst [vmem:[#allocation9 + $0x2d0] sm:$0xff] %v2620_v61  ;;  %2747 = vst [vmem:[#allocation9 + $0x2c8] sm:$0xff] %v2619_v62  ;;  %v2496_v15 = vmul.f32 %v3391_v14, %v2367_v0  ;;  %v2495_v16 = vmul.f32 %v3391_v14, %v2366_v1  ;;  %v2099_v0 = vld [vmem:[#allocation8 + $0x340] sm:$0xff] }
 0x22e   :  { %v1688_v11 = vpop.f32.mrb[48].mxu1  ;;  %v1176_v12 = vpop.f32.mrb[49].mxu0  ;;  %2749 = vst [vmem:[#allocation9 + $0x2d8] sm:$0xff] %v2621_v3  ;;  %v2622_v19 = vadd.f32 %v2494_v4, %v2087_v63  ;;  %v2497_v20 = vmul.f32 %v3391_v14, %v2368_v8  ;;  %v2369_v21 = vsub.f32 %v1174_v2, %v3380_v7  ;;  %v2100_v8 = vld [vmem:[#allocation8 + $0x348] sm:$0xff] }
 0x22f   :  { %v1690_v18 = vpop.f32.mrb[49].mxu1  ;;  %v2624_v22 = vadd.f32 %v2496_v15, %v2089_v5  ;;  %v2623_v23 = vadd.f32 %v2495_v16, %v2088_v6  ;;  %v2371_v25 = vsub.f32 %v1688_v11, %v3382_v9  ;;  %v2370_v26 = vsub.f32 %v1176_v12, %v3384_v10  ;;  %v2101_v6 = vld [vmem:[#allocation8 + $0x350] sm:$0xff] }
 0x230   :  { %2750 = vst [vmem:[#allocation9 + $0x2e0] sm:$0xff] %v2622_v19  ;;  %v2625_v28 = vadd.f32 %v2497_v20, %v2090_v17  ;;  %v2498_v29 = vmul.f32 %v3391_v14, %v2369_v21  ;;  %v2372_v32 = vsub.f32 %v1690_v18, %v3386_v13  ;;  %v2102_v18 = vld [vmem:[#allocation8 + $0x358] sm:$0xff] }
 0x231   :  { %v1180_v27 = vpop.f32.mrb[50].mxu0  ;;  %2752 = vst [vmem:[#allocation9 + $0x2f0] sm:$0xff] %v2624_v22  ;;  %2751 = vst [vmem:[#allocation9 + $0x2e8] sm:$0xff] %v2623_v23  ;;  %v2500_v35 = vmul.f32 %v3391_v14, %v2371_v25  ;;  %v2499_v36 = vmul.f32 %v3391_v14, %v2370_v26  ;;  %v2103_v25 = vld [vmem:[#allocation8 + $0x360] sm:$0xff] }
 0x232   :  { %v1694_v33 = vpop.f32.mrb[50].mxu1  ;;  %v1182_v34 = vpop.f32.mrb[51].mxu0  ;;  %2753 = vst [vmem:[#allocation9 + $0x2f8] sm:$0xff] %v2625_v28  ;;  %v2626_v39 = vadd.f32 %v2498_v29, %v2091_v24  ;;  %v2501_v40 = vmul.f32 %v3391_v14, %v2372_v32  ;;  %v2373_v41 = vsub.f32 %v1180_v27, %v3380_v7  ;;  %v2104_v32 = vld [vmem:[#allocation8 + $0x368] sm:$0xff] }
 0x233   :  { %v1696_v38 = vpop.f32.mrb[51].mxu1  ;;  %v2628_v42 = vadd.f32 %v2500_v35, %v2093_v30  ;;  %v2627_v43 = vadd.f32 %v2499_v36, %v2092_v31  ;;  %v2375_v45 = vsub.f32 %v1694_v33, %v3382_v9  ;;  %v2374_v46 = vsub.f32 %v1182_v34, %v3384_v10  ;;  %v2105_v31 = vld [vmem:[#allocation8 + $0x370] sm:$0xff] }
 0x234   :  { %2754 = vst [vmem:[#allocation9 + $0x300] sm:$0xff] %v2626_v39  ;;  %v2629_v48 = vadd.f32 %v2501_v40, %v2094_v37  ;;  %v2502_v49 = vmul.f32 %v3391_v14, %v2373_v41  ;;  %v2376_v52 = vsub.f32 %v1696_v38, %v3386_v13  ;;  %v2106_v38 = vld [vmem:[#allocation8 + $0x378] sm:$0xff] }
 0x235   :  { %v1186_v47 = vpop.f32.mrb[52].mxu0  ;;  %2756 = vst [vmem:[#allocation9 + $0x310] sm:$0xff] %v2628_v42  ;;  %2755 = vst [vmem:[#allocation9 + $0x308] sm:$0xff] %v2627_v43  ;;  %v2504_v55 = vmul.f32 %v3391_v14, %v2375_v45  ;;  %v2503_v56 = vmul.f32 %v3391_v14, %v2374_v46  ;;  %v2107_v45 = vld [vmem:[#allocation8 + $0x380] sm:$0xff] }
 0x236   :  { %v1700_v53 = vpop.f32.mrb[52].mxu1  ;;  %v1188_v54 = vpop.f32.mrb[53].mxu0  ;;  %2757 = vst [vmem:[#allocation9 + $0x318] sm:$0xff] %v2629_v48  ;;  %v2630_v59 = vadd.f32 %v2502_v49, %v2095_v44  ;;  %v2505_v60 = vmul.f32 %v3391_v14, %v2376_v52  ;;  %v2377_v61 = vsub.f32 %v1186_v47, %v3380_v7  ;;  %v2108_v52 = vld [vmem:[#allocation8 + $0x388] sm:$0xff] }
 0x237   :  { %v1702_v58 = vpop.f32.mrb[53].mxu1  ;;  %v2632_v62 = vadd.f32 %v2504_v55, %v2097_v50  ;;  %v2631_v63 = vadd.f32 %v2503_v56, %v2096_v51  ;;  %v2379_v1 = vsub.f32 %v1700_v53, %v3382_v9  ;;  %v2378_v2 = vsub.f32 %v1188_v54, %v3384_v10  ;;  %v2109_v51 = vld [vmem:[#allocation8 + $0x390] sm:$0xff] }
 0x238   :  { %2758 = vst [vmem:[#allocation9 + $0x320] sm:$0xff] %v2630_v59  ;;  %v2633_v4 = vadd.f32 %v2505_v60, %v2098_v57  ;;  %v2506_v5 = vmul.f32 %v3391_v14, %v2377_v61  ;;  %v2380_v11 = vsub.f32 %v1702_v58, %v3386_v13  ;;  %v2110_v58 = vld [vmem:[#allocation8 + $0x398] sm:$0xff] }
 0x239   :  { %v1192_v3 = vpop.f32.mrb[54].mxu0  ;;  %2760 = vst [vmem:[#allocation9 + $0x330] sm:$0xff] %v2632_v62  ;;  %2759 = vst [vmem:[#allocation9 + $0x328] sm:$0xff] %v2631_v63  ;;  %v2508_v16 = vmul.f32 %v3391_v14, %v2379_v1  ;;  %v2507_v17 = vmul.f32 %v3391_v14, %v2378_v2  ;;  %v2111_v1 = vld [vmem:[#allocation8 + $0x3a0] sm:$0xff] }
 0x23a   :  { %v1706_v12 = vpop.f32.mrb[54].mxu1  ;;  %v1194_v15 = vpop.f32.mrb[55].mxu0  ;;  %2761 = vst [vmem:[#allocation9 + $0x338] sm:$0xff] %v2633_v4  ;;  %v2634_v20 = vadd.f32 %v2506_v5, %v2099_v0  ;;  %v2509_v21 = vmul.f32 %v3391_v14, %v2380_v11  ;;  %v2381_v22 = vsub.f32 %v1192_v3, %v3380_v7  ;;  %v2112_v11 = vld [vmem:[#allocation8 + $0x3a8] sm:$0xff] }
 0x23b   :  { %v1708_v19 = vpop.f32.mrb[55].mxu1  ;;  %v2636_v23 = vadd.f32 %v2508_v16, %v2101_v6  ;;  %v2635_v24 = vadd.f32 %v2507_v17, %v2100_v8  ;;  %v2383_v26 = vsub.f32 %v1706_v12, %v3382_v9  ;;  %v2382_v27 = vsub.f32 %v1194_v15, %v3384_v10  ;;  %v2113_v8 = vld [vmem:[#allocation8 + $0x3b0] sm:$0xff] }
 0x23c   :  { %2762 = vst [vmem:[#allocation9 + $0x340] sm:$0xff] %v2634_v20  ;;  %v2637_v29 = vadd.f32 %v2509_v21, %v2102_v18  ;;  %v2510_v30 = vmul.f32 %v3391_v14, %v2381_v22  ;;  %v2384_v33 = vsub.f32 %v1708_v19, %v3386_v13  ;;  %v2114_v19 = vld [vmem:[#allocation8 + $0x3b8] sm:$0xff] }
 0x23d   :  { %v1198_v28 = vpop.f32.mrb[56].mxu0  ;;  %2764 = vst [vmem:[#allocation9 + $0x350] sm:$0xff] %v2636_v23  ;;  %2763 = vst [vmem:[#allocation9 + $0x348] sm:$0xff] %v2635_v24  ;;  %v2512_v36 = vmul.f32 %v3391_v14, %v2383_v26  ;;  %v2511_v37 = vmul.f32 %v3391_v14, %v2382_v27  ;;  %v2115_v26 = vld [vmem:[#allocation8 + $0x3c0] sm:$0xff] }
 0x23e   :  { %v1712_v34 = vpop.f32.mrb[56].mxu1  ;;  %v1200_v35 = vpop.f32.mrb[57].mxu0  ;;  %2765 = vst [vmem:[#allocation9 + $0x358] sm:$0xff] %v2637_v29  ;;  %v2638_v40 = vadd.f32 %v2510_v30, %v2103_v25  ;;  %v2513_v41 = vmul.f32 %v3391_v14, %v2384_v33  ;;  %v2385_v42 = vsub.f32 %v1198_v28, %v3380_v7  ;;  %v2116_v33 = vld [vmem:[#allocation8 + $0x3c8] sm:$0xff] }
 0x23f   :  { %v1714_v39 = vpop.f32.mrb[57].mxu1  ;;  %v2640_v43 = vadd.f32 %v2512_v36, %v2105_v31  ;;  %v2639_v44 = vadd.f32 %v2511_v37, %v2104_v32  ;;  %v2387_v46 = vsub.f32 %v1712_v34, %v3382_v9  ;;  %v2386_v47 = vsub.f32 %v1200_v35, %v3384_v10  ;;  %v2117_v32 = vld [vmem:[#allocation8 + $0x3d0] sm:$0xff] }
 0x240   :  { %2766 = vst [vmem:[#allocation9 + $0x360] sm:$0xff] %v2638_v40  ;;  %v2641_v49 = vadd.f32 %v2513_v41, %v2106_v38  ;;  %v2514_v50 = vmul.f32 %v3391_v14, %v2385_v42  ;;  %v2388_v53 = vsub.f32 %v1714_v39, %v3386_v13  ;;  %v2118_v39 = vld [vmem:[#allocation8 + $0x3d8] sm:$0xff] }
 0x241   :  { %v1204_v48 = vpop.f32.mrb[58].mxu0  ;;  %2768 = vst [vmem:[#allocation9 + $0x370] sm:$0xff] %v2640_v43  ;;  %2767 = vst [vmem:[#allocation9 + $0x368] sm:$0xff] %v2639_v44  ;;  %v2516_v56 = vmul.f32 %v3391_v14, %v2387_v46  ;;  %v2515_v57 = vmul.f32 %v3391_v14, %v2386_v47  ;;  %v2119_v46 = vld [vmem:[#allocation8 + $0x3e0] sm:$0xff] }
 0x242   :  { %v1718_v54 = vpop.f32.mrb[58].mxu1  ;;  %v1206_v55 = vpop.f32.mrb[59].mxu0  ;;  %2769 = vst [vmem:[#allocation9 + $0x378] sm:$0xff] %v2641_v49  ;;  %v2642_v60 = vadd.f32 %v2514_v50, %v2107_v45  ;;  %v2517_v61 = vmul.f32 %v3391_v14, %v2388_v53  ;;  %v2389_v62 = vsub.f32 %v1204_v48, %v3380_v7 }
 0x243   :  { %v1720_v59 = vpop.f32.mrb[59].mxu1  ;;  %v2644_v63 = vadd.f32 %v2516_v56, %v2109_v51  ;;  %v2643_v0 = vadd.f32 %v2515_v57, %v2108_v52  ;;  %v2391_v2 = vsub.f32 %v1718_v54, %v3382_v9  ;;  %v2390_v3 = vsub.f32 %v1206_v55, %v3384_v10  ;;  %v2121_v51 = vld [vmem:[#allocation8 + $0x3f0] sm:$0xff]  ;;  %v2120_v52 = vld [vmem:[#allocation8 + $0x3e8] sm:$0xff]  ;;  %v2122_v55 = vld [vmem:[#allocation8 + $0x3f8] sm:$0xff] }
 0x244   :  { %2770 = vst [vmem:[#allocation9 + $0x380] sm:$0xff] %v2642_v60  ;;  %v2645_v5 = vadd.f32 %v2517_v61, %v2110_v58  ;;  %v2518_v6 = vmul.f32 %v3391_v14, %v2389_v62  ;;  %v2392_v12 = vsub.f32 %v1720_v59, %v3386_v13 }
 0x245   :  { %v1210_v4 = vpop.f32.mrb[60].mxu0  ;;  %2772 = vst [vmem:[#allocation9 + $0x390] sm:$0xff] %v2644_v63  ;;  %2771 = vst [vmem:[#allocation9 + $0x388] sm:$0xff] %v2643_v0  ;;  %v2520_v17 = vmul.f32 %v3391_v14, %v2391_v2  ;;  %v2519_v18 = vmul.f32 %v3391_v14, %v2390_v3 }
 0x246   :  { %v1724_v15 = vpop.f32.mrb[60].mxu1  ;;  %v1212_v16 = vpop.f32.mrb[61].mxu0  ;;  %2773 = vst [vmem:[#allocation9 + $0x398] sm:$0xff] %v2645_v5  ;;  %v2646_v21 = vadd.f32 %v2518_v6, %v2111_v1  ;;  %v2521_v22 = vmul.f32 %v3391_v14, %v2392_v12  ;;  %v2393_v23 = vsub.f32 %v1210_v4, %v3380_v7 }
 0x247   :  { %v1726_v20 = vpop.f32.mrb[61].mxu1  ;;  %v2648_v24 = vadd.f32 %v2520_v17, %v2113_v8  ;;  %v2647_v25 = vadd.f32 %v2519_v18, %v2112_v11  ;;  %v2395_v27 = vsub.f32 %v1724_v15, %v3382_v9  ;;  %v2394_v28 = vsub.f32 %v1212_v16, %v3384_v10 }
 0x248   :  { %2774 = vst [vmem:[#allocation9 + $0x3a0] sm:$0xff] %v2646_v21  ;;  %v2649_v30 = vadd.f32 %v2521_v22, %v2114_v19  ;;  %v2522_v31 = vmul.f32 %v3391_v14, %v2393_v23  ;;  %v2396_v34 = vsub.f32 %v1726_v20, %v3386_v13 }
 0x249   :  { %v1216_v29 = vpop.f32.mrb[62].mxu0  ;;  %2776 = vst [vmem:[#allocation9 + $0x3b0] sm:$0xff] %v2648_v24  ;;  %2775 = vst [vmem:[#allocation9 + $0x3a8] sm:$0xff] %v2647_v25  ;;  %v2524_v37 = vmul.f32 %v3391_v14, %v2395_v27  ;;  %v2523_v38 = vmul.f32 %v3391_v14, %v2394_v28 }
 0x24a   :  { %v1730_v35 = vpop.f32.mrb[62].mxu1  ;;  %v1218_v36 = vpop.f32.mrb[63].mxu0  ;;  %2777 = vst [vmem:[#allocation9 + $0x3b8] sm:$0xff] %v2649_v30  ;;  %v2650_v41 = vadd.f32 %v2522_v31, %v2115_v26  ;;  %v2525_v42 = vmul.f32 %v3391_v14, %v2396_v34  ;;  %v2397_v43 = vsub.f32 %v1216_v29, %v3380_v7 }
 0x24b   :  { %v1732_v40 = vpop.f32.mrb[63].mxu1  ;;  %v2652_v44 = vadd.f32 %v2524_v37, %v2117_v32  ;;  %v2651_v45 = vadd.f32 %v2523_v38, %v2116_v33  ;;  %v2399_v47 = vsub.f32 %v1730_v35, %v3382_v9  ;;  %v2398_v48 = vsub.f32 %v1218_v36, %v3384_v10 }
 0x24c   :  { %2778 = vst [vmem:[#allocation9 + $0x3c0] sm:$0xff] %v2650_v41  ;;  %v2653_v49 = vadd.f32 %v2525_v42, %v2118_v39  ;;  %v2526_v50 = vmul.f32 %v3391_v14, %v2397_v43  ;;  %v2400_v53 = vsub.f32 %v1732_v40, %v3386_v13 }
 0x24d   :  { %2780 = vst [vmem:[#allocation9 + $0x3d0] sm:$0xff] %v2652_v44  ;;  %2779 = vst [vmem:[#allocation9 + $0x3c8] sm:$0xff] %v2651_v45  ;;  %v2528_v54 = vmul.f32 %v3391_v14, %v2399_v47  ;;  %v2527_v7 = vmul.f32 %v3391_v14, %v2398_v48 }
 0x24e   :  { %2781 = vst [vmem:[#allocation9 + $0x3d8] sm:$0xff] %v2653_v49  ;;  %v2654_v9 = vadd.f32 %v2526_v50, %v2119_v46  ;;  %v2529_v10 = vmul.f32 %v3391_v14, %v2400_v53 }
 0x24f   :  { %v2656_v56 = vadd.f32 %v2528_v54, %v2121_v51  ;;  %v2655_v57 = vadd.f32 %v2527_v7, %v2120_v52 }
 0x250   :  { %2782 = vst [vmem:[#allocation9 + $0x3e0] sm:$0xff] %v2654_v9  ;;  %v2657_v58 = vadd.f32 %v2529_v10, %v2122_v55 }
 0x251   :  { %2784 = vst [vmem:[#allocation9 + $0x3f0] sm:$0xff] %v2656_v56  ;;  %2783 = vst [vmem:[#allocation9 + $0x3e8] sm:$0xff] %v2655_v57 }
 0x252   :  { %2785 = vst [vmem:[#allocation9 + $0x3f8] sm:$0xff] %v2657_v58 }
 0x253   :  { %3272 = shalt.err (!%p3269_p0)
}
 0x254   :  { %s3273_s12 = scalar_lea.hbm %s3669_s5, 16384 }
 0x255   :  { %p3274_p1 = scmp.ne.s32.totalorder %s3669_s5, %s3273_s12  ;;  %p3277_p2 = scmp.lt.u32.totalorder %s3273_s12, %s3669_s5 }
 0x257   :  { %p3279_p3 = pnand %p3277_p2, %p3274_p1 }
 0x259   :  { %3282 = shalt.err (!%p3279_p3)
}
 0x25a   :  { %2797 = dma.vmem_to_hbm [thread:$0]  %s2792_s3, 16384, %s3669_s5, [#allocation5], %s3291_s30, %s3291_s30, %s3292_s6  }
 0x25b   :  { %3287 = dma.done.wait [#allocation5], 16384  }
 0x25c   :  { %3288 = vsyncadd [#allocation5], 4294950912 }
 0x25d   :  { %2801 = vsyncpa [#allocation4], 1 }
 0x25e   :  { %2802 = vsyncpa [#allocation7], 1 }
 0x25f   :  { %2803 = vsyncpa [#allocation5], 1 }

</bundles_post_ra>
